<compile_context>
chip_gen: v6e
topology: v6e:2x2x1
jax: 0.10.0
libtpu: 0.0.40
codegen_flags: <defaults>
</compile_context>

<pallas_src>
import numpy as np
import jax
import jax.numpy as jnp
from jax.experimental import pallas as pl
from jax.experimental.pallas import tpu as pltpu

# Constant from the original repo config (synthetic value here, deterministic).
REGION_SELECTION_CLASSIFIER_POS_WEIGHT = 2.2

INPUT_DIM = 1024
HIDDEN1 = 512
HIDDEN2 = 128
NUM_REGIONS = 29


def _round_up(x, m):
    return (x + m - 1) // m * m


# Row-tile cap: 512 keeps per-step VMEM well inside v5e's 16 MiB scoped default
# and leaves both v7x TensorCores busy via the >=2-grid-step rule below.  On
# v6e (HBM-bound on the f32 activation stream, 32 MiB scoped default) a 1024
# tile halves per-step pipeline overhead for large batches.
try:
    _DEVICE_KIND = jax.devices()[0].device_kind.lower()
except Exception:  # pragma: no cover - no backend available
    _DEVICE_KIND = ""
_IS_V6E = "v6" in _DEVICE_KIND
MAX_TM = 1024 if _IS_V6E else 512


# ----------------------------------------------------------------------------
# Kernel: one row-tile of the 3-layer MLP (1024 -> 512 -> 128 -> 1).
#   x tile   [TM, 1024]  (cast to bf16 in-kernel -> no extra HBM pass)
#   w1,w2    bf16, resident in VMEM (constant index maps, single-buffered)
#   b1,b2    f32 row vectors
#   w3       f32 (1, 128) row vector  -> layer 3 is VPU mul + XLU lane reduce
#   b3       f32 (1, 1) scalar
#   out tile [TM, 1] f32 logits
# ----------------------------------------------------------------------------
def _mlp_kernel(x_ref, w1_ref, b1_ref, w2_ref, b2_ref, w3_ref, b3_ref, out_ref):
    x = x_ref[...].astype(jnp.bfloat16)
    h1 = jnp.dot(x, w1_ref[...], preferred_element_type=jnp.float32) + b1_ref[...]
    h1 = jnp.maximum(h1, 0.0).astype(jnp.bfloat16)
    h2 = jnp.dot(h1, w2_ref[...], preferred_element_type=jnp.float32) + b2_ref[...]
    h2 = jnp.maximum(h2, 0.0)  # stays f32; final layer runs on VPU/XLU
    # Final 128 -> 1 layer: elementwise multiply + lane reduction (no padded MXU).
    out_ref[...] = jnp.sum(h2 * w3_ref[...], axis=-1, keepdims=True) + b3_ref[...]


def _choose_tm(rows):
    if rows <= 16:
        return _round_up(rows, 8)
    # At least 2 grid steps for small/medium row counts so v7x's two
    # TensorCores both get work; cap the tile at MAX_TM for large batches.
    return min(MAX_TM, _round_up(pl.cdiv(rows, 2), 16))


def _mlp_pallas(x, w1, b1, w2, b2, w3, b3):
    rows = x.shape[0]
    tm = _choose_tm(rows)
    grid = (pl.cdiv(rows, tm),)

    # Constant index maps never advance -> one pipeline buffer is enough.
    resident = dict(pipeline_mode=pl.Buffered(1))

    compiler_kwargs = dict(dimension_semantics=("parallel",))
    if MAX_TM >= 1024:
        compiler_kwargs["vmem_limit_bytes"] = 32 * 1024 * 1024

    return pl.pallas_call(
        _mlp_kernel,
        out_shape=jax.ShapeDtypeStruct((rows, 1), jnp.float32),
        grid_spec=pltpu.PrefetchScalarGridSpec(
            num_scalar_prefetch=0,
            grid=grid,
            in_specs=[
                pl.BlockSpec((tm, INPUT_DIM), lambda i: (i, 0)),                  # x (row-tiled)
                pl.BlockSpec((INPUT_DIM, HIDDEN1), lambda i: (0, 0), **resident),  # w1 resident
                pl.BlockSpec((1, HIDDEN1), lambda i: (0, 0), **resident),          # b1
                pl.BlockSpec((HIDDEN1, HIDDEN2), lambda i: (0, 0), **resident),    # w2
                pl.BlockSpec((1, HIDDEN2), lambda i: (0, 0), **resident),          # b2
                pl.BlockSpec((1, HIDDEN2), lambda i: (0, 0), **resident),          # w3 row vector
                pl.BlockSpec((1, 1), lambda i: (0, 0), **resident),                # b3 scalar
            ],
            out_specs=pl.BlockSpec((tm, 1), lambda i: (i, 0)),
        ),
        compiler_params=pltpu.CompilerParams(**compiler_kwargs),
    )(x, w1, b1, w2, b2, w3, b3)


# ----------------------------------------------------------------------------
# Parameter init (deterministic, mimics PyTorch Linear default init bounds).
# w1/w2 stored in bf16 (native MXU dtype, half the weight HBM traffic);
# biases and the tiny layer-3 vector stay f32.
# ----------------------------------------------------------------------------
def init_params(key):
    def linear(k, fan_in, fan_out):
        kw, kb = jax.random.split(k)
        bound = 1.0 / np.sqrt(fan_in)
        w = jax.random.uniform(kw, (fan_in, fan_out), jnp.float32, -bound, bound)
        b = jax.random.uniform(kb, (fan_out,), jnp.float32, -bound, bound)
        return w, b

    k1, k2, k3 = jax.random.split(key, 3)
    w1, b1 = linear(k1, INPUT_DIM, HIDDEN1)
    w2, b2 = linear(k2, HIDDEN1, HIDDEN2)
    w3, b3 = linear(k3, HIDDEN2, 1)

    return dict(
        w1=w1.astype(jnp.bfloat16), b1=b1.reshape(1, HIDDEN1),
        w2=w2.astype(jnp.bfloat16), b2=b2.reshape(1, HIDDEN2),
        w3=w3.reshape(1, HIDDEN2),   # f32 row vector, consumed on the VPU
        b3=b3.reshape(1, 1),
    )


# ----------------------------------------------------------------------------
# Jitted device cores.
# ----------------------------------------------------------------------------
@jax.jit
def _logits_and_selection(params, region_features, class_detected):
    B = region_features.shape[0]
    rows = B * NUM_REGIONS
    # No padded activation copy: the grid covers rows with cdiv and Pallas
    # masks the ragged last tile (rows are independent, so padding is safe).
    x = region_features.reshape(rows, INPUT_DIM)
    logits = _mlp_pallas(
        x,
        params["w1"], params["b1"],
        params["w2"], params["b2"],
        params["w3"], params["b3"],
    ).reshape(B, NUM_REGIONS)
    # selected_regions = (logits > -1) & class_detected
    selected_regions = jnp.logical_and(logits > -1.0, class_detected)
    return logits, selected_regions


@jax.jit
def _bce_loss(logits, class_detected, region_has_sentence):
    # BCEWithLogitsLoss(pos_weight), mean over class_detected elements.
    # Stable form: l = pw*y*softplus(-x) + (1-y)*softplus(x).
    det = class_detected.astype(jnp.float32)
    y = region_has_sentence.astype(jnp.float32)
    pw = jnp.float32(REGION_SELECTION_CLASSIFIER_POS_WEIGHT)
    per_elem = pw * y * jax.nn.softplus(-logits) + (1.0 - y) * jax.nn.softplus(logits)
    # Matches torch semantics exactly (NaN if no region is detected).
    return jnp.sum(per_elem * det) / jnp.sum(det)


# ----------------------------------------------------------------------------
# Forward pass (matches the PyTorch module semantics).
# ----------------------------------------------------------------------------
def forward(params, region_features, class_detected, region_has_sentence=None,
            training=False):
    """Mirrors BinaryClassifierSelectionRegionV1.forward."""
    logits, selected_regions = _logits_and_selection(
        params, region_features, class_detected)

    loss = None
    if region_has_sentence is not None:
        # Loss branch is skipped entirely at inference when no labels are given.
        loss = _bce_loss(logits, class_detected, region_has_sentence)

    if training:
        return loss

    # TODO(synk): torch boolean indexing returns a data-dependent number of
    # rows; producing that shape requires one host sync on the (B,29) boolean
    # mask.  Only the selected rows are gathered on device (no full-matrix
    # argsort/compaction).
    B = region_features.shape[0]
    mask = np.asarray(selected_regions).reshape(-1)
    idx = np.flatnonzero(mask)
    flat = region_features.reshape(B * NUM_REGIONS, INPUT_DIM)
    if idx.size == 0:
        selected_region_features = jnp.zeros((0, INPUT_DIM), region_features.dtype)
    else:
        selected_region_features = jnp.take(
            flat, jnp.asarray(idx, dtype=jnp.int32), axis=0)
    return loss, selected_regions, selected_region_features


# ----------------------------------------------------------------------------
# Pure-JAX reference (mirrors the kernel's bf16-input / f32-accumulate path).
# ----------------------------------------------------------------------------
def _reference_logits(params, region_features):
    B = region_features.shape[0]
    x = region_features.reshape(B * NUM_REGIONS, INPUT_DIM).astype(jnp.bfloat16)
    h1 = jnp.dot(x, params["w1"], preferred_element_type=jnp.float32) + params["b1"]
    h1 = jnp.maximum(h1, 0.0).astype(jnp.bfloat16)
    h2 = jnp.dot(h1, params["w2"], preferred_element_type=jnp.float32) + params["b2"]
    h2 = jnp.maximum(h2, 0.0)
    out = jnp.sum(h2 * params["w3"], axis=-1, keepdims=True) + params["b3"]
    return out[:, 0].reshape(B, NUM_REGIONS)


if __name__ == "__main__":
    key = jax.random.PRNGKey(0)
    kp, kx, kd, ks = jax.random.split(key, 4)

    params = init_params(kp)

    B = 2
    region_features = jax.random.normal(kx, (B, NUM_REGIONS, INPUT_DIM), jnp.float32)
    class_detected = jax.random.bernoulli(kd, 0.8, (B, NUM_REGIONS))
    region_has_sentence = jax.random.bernoulli(ks, 0.5, (B, NUM_REGIONS))

    # Validation-mode call (labels given).
    loss, selected_regions, selected_region_features = forward(
        params, region_features, class_detected, region_has_sentence, training=False
    )
    jax.block_until_ready((loss, selected_regions, selected_region_features))

    # Inference-mode call (no labels): loss branch must be skipped.
    loss_none, sel2, feat2 = forward(
        params, region_features, class_detected, None, training=False
    )
    jax.block_until_ready((sel2, feat2))
    assert loss_none is None

    # Validate kernel logits against a pure-JAX reference.
    logits_kernel, _ = _logits_and_selection(params, region_features, class_detected)
    logits_ref = _reference_logits(params, region_features)
    np.testing.assert_allclose(
        np.asarray(logits_kernel), np.asarray(logits_ref), rtol=1e-3, atol=1e-3
    )

    assert selected_regions.shape == (B, NUM_REGIONS)
    assert selected_region_features.ndim == 2
    assert selected_region_features.shape[1] == INPUT_DIM
    assert selected_region_features.shape[0] == int(jnp.sum(selected_regions))
    assert bool(jnp.all(selected_regions == sel2))
    assert np.isfinite(float(loss))

    print("KERNEL_OK")
</pallas_src>

<mosaic_0001>
module attributes {stable_mosaic.version = 11 : i64} {
  func.func @_mlp_kernel(%arg0: i32, %arg1: memref<32x1024xf32, #tpu.memory_space<vmem>>, %arg2: memref<1024x512xbf16, #tpu.memory_space<vmem>>, %arg3: memref<1x512xf32, #tpu.memory_space<vmem>>, %arg4: memref<512x128xbf16, #tpu.memory_space<vmem>>, %arg5: memref<1x128xf32, #tpu.memory_space<vmem>>, %arg6: memref<1x128xf32, #tpu.memory_space<vmem>>, %arg7: memref<1x1xf32, #tpu.memory_space<vmem>>, %arg8: memref<32x1xf32, #tpu.memory_space<vmem>>) attributes {dimension_semantics = [#tpu.dimension_semantics<parallel>], iteration_bounds = array<i64: 2>, scalar_prefetch = 0 : i64, scratch_operands = 0 : i64, tpu.core_type = #tpu.core_type<tc>, window_params = [{transform_indices = @transform_0, window_bounds = array<i64: 32, 1024>}, {pipeline_mode = #tpu.pipeline_mode<synchronous>, transform_indices = @transform_1, window_bounds = array<i64: 1024, 512>}, {pipeline_mode = #tpu.pipeline_mode<synchronous>, transform_indices = @transform_2, window_bounds = array<i64: 1, 512>}, {pipeline_mode = #tpu.pipeline_mode<synchronous>, transform_indices = @transform_3, window_bounds = array<i64: 512, 128>}, {pipeline_mode = #tpu.pipeline_mode<synchronous>, transform_indices = @transform_4, window_bounds = array<i64: 1, 128>}, {pipeline_mode = #tpu.pipeline_mode<synchronous>, transform_indices = @transform_5, window_bounds = array<i64: 1, 128>}, {pipeline_mode = #tpu.pipeline_mode<synchronous>, transform_indices = @transform_6, window_bounds = array<i64: 1, 1>}, {transform_indices = @transform_7, window_bounds = array<i64: 32, 1>}]} {
    %c0 = arith.constant 0 : index
    %c0_0 = arith.constant 0 : index
    %0 = vector.load %arg1[%c0, %c0_0] : memref<32x1024xf32, #tpu.memory_space<vmem>>, vector<32x1024xf32>
    %1 = arith.truncf %0 : vector<32x1024xf32> to vector<32x1024xbf16>
    %c0_1 = arith.constant 0 : index
    %c0_2 = arith.constant 0 : index
    %2 = vector.load %arg2[%c0_1, %c0_2] : memref<1024x512xbf16, #tpu.memory_space<vmem>>, vector<1024x512xbf16>
    %cst = arith.constant dense<0.000000e+00> : vector<32x512xf32>
    %3 = tpu.matmul %1, %2, %cst {dimension_numbers = #tpu.dot_dimension_numbers<[1], [0], [0], [1], [0, 0, 1, 1], [], []>} : vector<32x1024xbf16>, vector<1024x512xbf16>, vector<32x512xf32> -> vector<32x512xf32>
    %c0_3 = arith.constant 0 : index
    %c0_4 = arith.constant 0 : index
    %4 = vector.load %arg3[%c0_3, %c0_4] : memref<1x512xf32, #tpu.memory_space<vmem>>, vector<1x512xf32>
    %5 = vector.broadcast %4 : vector<1x512xf32> to vector<32x512xf32>
    %6 = arith.addf %3, %5 : vector<32x512xf32>
    %cst_5 = arith.constant 0.000000e+00 : f32
    %7 = vector.broadcast %cst_5 : f32 to vector<32x512xf32>
    %8 = arith.maximumf %6, %7 : vector<32x512xf32>
    %9 = arith.truncf %8 : vector<32x512xf32> to vector<32x512xbf16>
    %c0_6 = arith.constant 0 : index
    %c0_7 = arith.constant 0 : index
    %10 = vector.load %arg4[%c0_6, %c0_7] : memref<512x128xbf16, #tpu.memory_space<vmem>>, vector<512x128xbf16>
    %cst_8 = arith.constant dense<0.000000e+00> : vector<32x128xf32>
    %11 = tpu.matmul %9, %10, %cst_8 {dimension_numbers = #tpu.dot_dimension_numbers<[1], [0], [0], [1], [0, 0, 1, 1], [], []>} : vector<32x512xbf16>, vector<512x128xbf16>, vector<32x128xf32> -> vector<32x128xf32>
    %c0_9 = arith.constant 0 : index
    %c0_10 = arith.constant 0 : index
    %12 = vector.load %arg5[%c0_9, %c0_10] : memref<1x128xf32, #tpu.memory_space<vmem>>, vector<1x128xf32>
    %13 = vector.broadcast %12 : vector<1x128xf32> to vector<32x128xf32>
    %14 = arith.addf %11, %13 : vector<32x128xf32>
    %cst_11 = arith.constant 0.000000e+00 : f32
    %15 = vector.broadcast %cst_11 : f32 to vector<32x128xf32>
    %16 = arith.maximumf %14, %15 : vector<32x128xf32>
    %c0_12 = arith.constant 0 : index
    %c0_13 = arith.constant 0 : index
    %17 = vector.load %arg6[%c0_12, %c0_13] : memref<1x128xf32, #tpu.memory_space<vmem>>, vector<1x128xf32>
    %18 = vector.broadcast %17 : vector<1x128xf32> to vector<32x128xf32>
    %19 = arith.mulf %16, %18 : vector<32x128xf32>
    %cst_14 = arith.constant dense<0.000000e+00> : vector<32xf32>
    %20 = vector.multi_reduction <add>, %19, %cst_14 [1] : vector<32x128xf32> to vector<32xf32>
    %21 = vector.shape_cast %20 : vector<32xf32> to vector<32x1xf32>
    %c0_15 = arith.constant 0 : index
    %c0_16 = arith.constant 0 : index
    %22 = vector.load %arg7[%c0_15, %c0_16] : memref<1x1xf32, #tpu.memory_space<vmem>>, vector<1x1xf32>
    %23 = vector.broadcast %22 : vector<1x1xf32> to vector<32x1xf32>
    %24 = arith.addf %21, %23 : vector<32x1xf32>
    %c0_17 = arith.constant 0 : index
    %c0_18 = arith.constant 0 : index
    %25 = vector.load %arg8[%c0_17, %c0_18] : memref<32x1xf32, #tpu.memory_space<vmem>>, vector<32x1xf32>
    tpu.vector_store %arg8[%c0_17, %c0_18], %24 {strides = array<i32>} : memref<32x1xf32, #tpu.memory_space<vmem>>, vector<32x1xf32>,
    return
  }
  func.func @transform_0(%arg0: i32) -> (i32, i32) {
    %c0_i32 = arith.constant 0 : i32
    %c0_i32_0 = arith.constant 0 : i32
    return %arg0, %c0_i32 : i32, i32
  }
  func.func @transform_1(%arg0: i32) -> (i32, i32) {
    %c0_i32 = arith.constant 0 : i32
    %c0_i32_0 = arith.constant 0 : i32
    %c0_i32_1 = arith.constant 0 : i32
    return %c0_i32, %c0_i32_0 : i32, i32
  }
  func.func @transform_2(%arg0: i32) -> (i32, i32) {
    %c0_i32 = arith.constant 0 : i32
    %c0_i32_0 = arith.constant 0 : i32
    %c0_i32_1 = arith.constant 0 : i32
    return %c0_i32, %c0_i32_0 : i32, i32
  }
  func.func @transform_3(%arg0: i32) -> (i32, i32) {
    %c0_i32 = arith.constant 0 : i32
    %c0_i32_0 = arith.constant 0 : i32
    %c0_i32_1 = arith.constant 0 : i32
    return %c0_i32, %c0_i32_0 : i32, i32
  }
  func.func @transform_4(%arg0: i32) -> (i32, i32) {
    %c0_i32 = arith.constant 0 : i32
    %c0_i32_0 = arith.constant 0 : i32
    %c0_i32_1 = arith.constant 0 : i32
    return %c0_i32, %c0_i32_0 : i32, i32
  }
  func.func @transform_5(%arg0: i32) -> (i32, i32) {
    %c0_i32 = arith.constant 0 : i32
    %c0_i32_0 = arith.constant 0 : i32
    %c0_i32_1 = arith.constant 0 : i32
    return %c0_i32, %c0_i32_0 : i32, i32
  }
  func.func @transform_6(%arg0: i32) -> (i32, i32) {
    %c0_i32 = arith.constant 0 : i32
    %c0_i32_0 = arith.constant 0 : i32
    %c0_i32_1 = arith.constant 0 : i32
    return %c0_i32, %c0_i32_0 : i32, i32
  }
  func.func @transform_7(%arg0: i32) -> (i32, i32) {
    %c0_i32 = arith.constant 0 : i32
    %c0_i32_0 = arith.constant 0 : i32
    return %arg0, %c0_i32 : i32, i32
  }
}

</mosaic_0001>

<bundles_post_ra>
// kernel: _logits_and_selection.1
= control target key start
LH: loop header
LB: loop body
LE: loop exit
PB: predicated region body
PF: predicated region fallthrough
CT: control target
= control target key end

     0   :  { %s3969_s0 = inlined_call_operand.vmem [shape: f32[58,1024], index: 0, kind: input, shape index: {}]   ;;  %s3970_s1 = inlined_call_operand.hbm [shape: bf16[1024,512], index: 1, kind: input, shape index: {}]   ;;  %s3971_s2 = inlined_call_operand.vmem [shape: f32[1,512], index: 2, kind: input, shape index: {}]   ;;  %s3972_s3 = inlined_call_operand.vmem [shape: bf16[512,128], index: 3, kind: input, shape index: {}]   ;;  %s3973_s4 = inlined_call_operand.vmem [shape: f32[1,128], index: 4, kind: input, shape index: {}]   ;;  %s3974_s5 = inlined_call_operand.vmem [shape: f32[1,128], index: 5, kind: input, shape index: {}]   ;;  %s3975_s6 = inlined_call_operand.<no memory space> [shape: f32[1,1], index: 6, kind: input, shape index: {}]   ;;  %s3976_s7 = inlined_call_operand.vmem [shape: f32[58,1], index: 7, kind: output, shape index: {}]  }
   0x1   :  { %v12_v0 = vstv %s3975_s6 }
   0x2   :  { %13 = vst [vmem:[#allocation2] sm:$0x1] %v12_v0 }
   0x3   :  { %14 = vsyncpa [#allocation4], 0  ;;  %s3708_s26 = smov 0  }
   0x4 LB: > { %s2825_s27 = sadd.s32 4294967295, %s3660_s26   ;;  %p2827_p0 = scmp.ge.s32.totalorder %s3660_s26, 1  ;;  %s3660_s26 = sphi %s3708_s26, %s20_s26  }
   0x5   : > { %p203_p1 = scmp.lt.s32.totalorder %s3660_s26, 3  ;;  %s3662_s28 = smov [#allocation3]  }
   0x6   : > { %s215_s29 = sshll.u32 %s3662_s28, 4  ;;  %p3722_p3 = scmp.eq.s32.totalorder %s2825_s27, 0  ;;  %s216_s29 = int_to_ptr.vmem [resolvable:$true] %s215_s29 }
   0x7   : > { %p3716_p2 = pnand %p2827_p0, %p203_p1  ;;  %s3635_s8 = scalar_lea.vmem %s216_s29, 32768 }
   0x8   : > { %p3636_p7 = scmp.ne.s32.totalorder %s216_s29, %s3635_s8  ;;  %p3643_p10 = scmp.lt.s32.totalorder %s216_s29, %s216_s29 }
   0x9   : > { %p3191_p4 = pneg %p3716_p2  ;;  %p3644_p11 = scmp.lt.s32.totalorder %s3635_s8, %s3635_s8 }
   0xb   : > { %p3192_p5 = pnand %p3722_p3, %p3191_p4  ;;  %p3645_p12 = por %p3644_p11, %p3643_p10 }
   0xd   : > { %p3626_p6 = pneg %p3192_p5 }
   0xf   : > { %p3638_p8 = pnand %p3636_p7, %p3626_p6 }
  0x11   : > { %p3639_p9 = pneg %p3638_p8 }
  0x13   : > { %p3646_p13 = pnand %p3645_p12, %p3639_p9 }
  0x15   : > { %3649 = shalt.err (!%p3646_p13)
}
  0x16   : > { %s3663_s9 = smov 256   ;;  %s3664_s10 = smov 16  }
  0x17   : > { %3194 = dma.hbm_to_vmem [thread:$0]  (!%p3192_p5), %s3970_s1, 32768, %s216_s29, [#allocation4], %s3663_s9, %s3663_s9, %s3664_s10  }
  0x18   : > { %256 = sbr.rel (%p3716_p2) target bundleno = 851 (0x353), region = 48 }
  0x1d   : > { %3655 = dma.done.wait (%p3722_p3), [#allocation4], 32768  }
  0x1e   : > { %3657 = vsyncadd (%p3722_p3), [#allocation4], 4294934528  ;;  %v3208_v1 = vld [vmem:[#allocation3 + $0xe4] ss:$16 sps:$4 sm:$0xff]   ;;  %v3212_v3 = vld [vmem:[#allocation3 + $0xe0] ss:$16 sps:$4 sm:$0xff]  }
  0x1f   : > { %v3210_v2 = vld [vmem:[#allocation3 + $0x2e4] ss:$16 sps:$4 sm:$0xff]   ;;  %1909 = vmatprep.subr.bf16.mxu0 %v3208_v1  ;;  %v3213_v4 = vld [vmem:[#allocation3 + $0x2e0] ss:$16 sps:$4 sm:$0xff]   ;;  %s2832_s13 = sshll.u32 %s2825_s27, 2  ;;  %vm2752_vm0 = vcmask 7168  }
  0x20   : > { %1962 = vmatprep.subr.bf16.mxu1 %v3210_v2  ;;  %v3214_v5 = vld [vmem:[#allocation3 + $0xc4] ss:$16 sps:$4 sm:$0xff]   ;;  %1910 = vmatpush1.bf16.msra.mxu0 %v3212_v3  ;;  %v3218_v7 = vld [vmem:[#allocation3 + $0xc0] ss:$16 sps:$4 sm:$0xff]   ;;  %p290_p0 = scmp.lt.s32.totalorder %s2832_s13, 7 }
  0x21   : > { %1963 = vmatpush1.bf16.msra.mxu1 %v3213_v4  ;;  %v3216_v6 = vld [vmem:[#allocation3 + $0x2c4] ss:$16 sps:$4 sm:$0xff]   ;;  %1911 = vmatprep.subr.bf16.mxu0 %v3214_v5  ;;  %v3219_v8 = vld [vmem:[#allocation3 + $0x2c0] ss:$16 sps:$4 sm:$0xff]  }
  0x22   : > { %1964 = vmatprep.subr.bf16.mxu1 %v3216_v6  ;;  %v3220_v9 = vld [vmem:[#allocation3 + $0xa4] ss:$16 sps:$4 sm:$0xff]   ;;  %v3224_v11 = vld [vmem:[#allocation3 + $0xa0] ss:$16 sps:$4 sm:$0xff]   ;;  %s3980_s13 = smov (!%p290_p0, %s2832_s13), 7 }
  0x23   : > { %v3222_v10 = vld [vmem:[#allocation3 + $0x2a4] ss:$16 sps:$4 sm:$0xff]   ;;  %v3225_v12 = vld [vmem:[#allocation3 + $0x2a0] ss:$16 sps:$4 sm:$0xff]   ;;  %s3130_s14 = sshll.u32 %s3980_s13, 6  ;;  %s2836_s22 = sshll.u32 %s3980_s13, 3 }
  0x24   : > { %1912 = vmatpush1.bf16.msra.mxu0 %v3218_v7  ;;  %v3226_v13 = vld [vmem:[#allocation3 + $0x84] ss:$16 sps:$4 sm:$0xff]   ;;  %v3230_v15 = vld [vmem:[#allocation3 + $0x80] ss:$16 sps:$4 sm:$0xff]   ;;  %s3747_s17 = scalar_lea.vmem %s3969_s0, %s3130_s14  ;;  %s300_s25 = scalar_lea.vmem %s3976_s7, %s2836_s22 }
  0x25   : > { %1965 = vmatpush1.bf16.msra.mxu1 %v3219_v8  ;;  %1913 = vmatprep.subr.bf16.mxu0 %v3220_v9  ;;  %v3228_v14 = vld [vmem:[#allocation3 + $0x284] ss:$16 sps:$4 sm:$0xff]   ;;  %v3231_v16 = vld [vmem:[#allocation3 + $0x280] ss:$16 sps:$4 sm:$0xff]  }
  0x26   : > { %1966 = vmatprep.subr.bf16.mxu1 %v3222_v10  ;;  %v3232_v17 = vld [vmem:[#allocation3 + $0x64] ss:$16 sps:$4 sm:$0xff]   ;;  %v3236_v19 = vld [vmem:[#allocation3 + $0x60] ss:$16 sps:$4 sm:$0xff]  }
  0x27   : > { %v3234_v18 = vld [vmem:[#allocation3 + $0x264] ss:$16 sps:$4 sm:$0xff]   ;;  %v3237_v20 = vld [vmem:[#allocation3 + $0x260] ss:$16 sps:$4 sm:$0xff]  }
  0x28   : > { %1914 = vmatpush1.bf16.msra.mxu0 %v3224_v11  ;;  %v3238_v21 = vld [vmem:[#allocation3 + $0x44] ss:$16 sps:$4 sm:$0xff]   ;;  %v3242_v23 = vld [vmem:[#allocation3 + $0x40] ss:$16 sps:$4 sm:$0xff]  }
  0x29   : > { %1967 = vmatpush1.bf16.msra.mxu1 %v3225_v12  ;;  %1915 = vmatprep.subr.bf16.mxu0 %v3226_v13  ;;  %v3240_v22 = vld [vmem:[#allocation3 + $0x244] ss:$16 sps:$4 sm:$0xff]   ;;  %v3243_v24 = vld [vmem:[#allocation3 + $0x240] ss:$16 sps:$4 sm:$0xff]  }
  0x2a   : > { %1968 = vmatprep.subr.bf16.mxu1 %v3228_v14  ;;  %v3244_v25 = vld [vmem:[#allocation3 + $0x24] ss:$16 sps:$4 sm:$0xff]   ;;  %v3248_v27 = vld [vmem:[#allocation3 + $0x20] ss:$16 sps:$4 sm:$0xff]  }
  0x2b   : > { %v3246_v26 = vld [vmem:[#allocation3 + $0x224] ss:$16 sps:$4 sm:$0xff]   ;;  %v3249_v28 = vld [vmem:[#allocation3 + $0x220] ss:$16 sps:$4 sm:$0xff]  }
  0x2c   : > { %1916 = vmatpush1.bf16.msra.mxu0 %v3230_v15  ;;  %v3250_v29 = vld [vmem:[#allocation3 + $0x4] ss:$16 sps:$4 sm:$0xff]   ;;  %v3254_v31 = vld [vmem:[#allocation3] ss:$16 sps:$4 sm:$0xff]  }
  0x2d   : > { %1969 = vmatpush1.bf16.msra.mxu1 %v3231_v16  ;;  %1917 = vmatprep.subr.bf16.mxu0 %v3232_v17  ;;  %v3252_v30 = vld [vmem:[#allocation3 + $0x204] ss:$16 sps:$4 sm:$0xff]   ;;  %v3255_v32 = vld [vmem:[#allocation3 + $0x200] ss:$16 sps:$4 sm:$0xff]  }
  0x2e   : > { %1970 = vmatprep.subr.bf16.mxu1 %v3234_v18  ;;  %v3256_v33 = vld [vmem:[#allocation3 + $0x1e4] ss:$16 sps:$4 sm:$0xff]   ;;  %v3260_v35 = vld [vmem:[#allocation3 + $0x1e0] ss:$16 sps:$4 sm:$0xff]  }
  0x2f   : > { %v3258_v34 = vld [vmem:[#allocation3 + $0x3e4] ss:$16 sps:$4 sm:$0xff]   ;;  %v3261_v36 = vld [vmem:[#allocation3 + $0x3e0] ss:$16 sps:$4 sm:$0xff]  }
  0x30   : > { %1918 = vmatpush1.bf16.msra.mxu0 %v3236_v19  ;;  %v3262_v37 = vld [vmem:[#allocation3 + $0x1c4] ss:$16 sps:$4 sm:$0xff]   ;;  %v3266_v39 = vld [vmem:[#allocation3 + $0x1c0] ss:$16 sps:$4 sm:$0xff]  }
  0x31   : > { %1971 = vmatpush1.bf16.msra.mxu1 %v3237_v20  ;;  %1919 = vmatprep.subr.bf16.mxu0 %v3238_v21  ;;  %v3264_v38 = vld [vmem:[#allocation3 + $0x3c4] ss:$16 sps:$4 sm:$0xff]   ;;  %v3267_v40 = vld [vmem:[#allocation3 + $0x3c0] ss:$16 sps:$4 sm:$0xff]  }
  0x32   : > { %1972 = vmatprep.subr.bf16.mxu1 %v3240_v22  ;;  %v3268_v41 = vld [vmem:[#allocation3 + $0x1a4] ss:$16 sps:$4 sm:$0xff]   ;;  %v3272_v43 = vld [vmem:[#allocation3 + $0x1a0] ss:$16 sps:$4 sm:$0xff]  }
  0x33   : > { %v3270_v42 = vld [vmem:[#allocation3 + $0x3a4] ss:$16 sps:$4 sm:$0xff]   ;;  %v3273_v44 = vld [vmem:[#allocation3 + $0x3a0] ss:$16 sps:$4 sm:$0xff]  }
  0x34   : > { %1920 = vmatpush1.bf16.msra.mxu0 %v3242_v23  ;;  %v3274_v45 = vld [vmem:[#allocation3 + $0x184] ss:$16 sps:$4 sm:$0xff]   ;;  %v3278_v51 = vld [vmem:[#allocation3 + $0x180] ss:$16 sps:$4 sm:$0xff]  }
  0x35   : > { %1973 = vmatpush1.bf16.msra.mxu1 %v3243_v24  ;;  %1921 = vmatprep.subr.bf16.mxu0 %v3244_v25  ;;  %v3276_v46 = vld [vmem:[#allocation3 + $0x384] ss:$16 sps:$4 sm:$0xff]   ;;  %v3279_v52 = vld [vmem:[#allocation3 + $0x380] ss:$16 sps:$4 sm:$0xff]  }
  0x36   : > { %1974 = vmatprep.subr.bf16.mxu1 %v3246_v26  ;;  %v304_v47 = vld [vmem:[%s3747_s17 + $0x8] sm:$0xff]  ;;  %v306_v49 = vld [vmem:[%s3747_s17 + $0x18] sm:$0xff]  ;;  %v3284_v57 = vld [vmem:[#allocation3 + $0x160] ss:$16 sps:$4 sm:$0xff]  }
  0x37   : > { %v312_v48 = vld [vmem:[%s3747_s17 + $0x48] sm:$0xff]  ;;  %v314_v50 = vld [vmem:[%s3747_s17 + $0x58] sm:$0xff]  ;;  %v3285_v58 = vld [vmem:[#allocation3 + $0x360] ss:$16 sps:$4 sm:$0xff]  }
  0x38   : > { %1922 = vmatpush1.bf16.msra.mxu0 %v3248_v27  ;;  %v3280_v53 = vld [vmem:[#allocation3 + $0x164] ss:$16 sps:$4 sm:$0xff]   ;;  %v3753_v54 = vpack.c.bf16 %v312_v48, %v304_v47  ;;  %v3755_v55 = vpack.c.bf16 %v314_v50, %v306_v49  ;;  %v3290_v61 = vld [vmem:[#allocation3 + $0x140] ss:$16 sps:$4 sm:$0xff]  }
  0x39   : > { %1975 = vmatpush1.bf16.msra.mxu1 %v3249_v28  ;;  %1923 = vmatprep.subr.bf16.mxu0 %v3250_v29  ;;  %v3282_v56 = vld [vmem:[#allocation3 + $0x364] ss:$16 sps:$4 sm:$0xff]   ;;  %v3291_v62 = vld [vmem:[#allocation3 + $0x340] ss:$16 sps:$4 sm:$0xff]  }
  0x3a   : > { %1976 = vmatprep.subr.bf16.mxu1 %v3252_v30  ;;  %1941 = vmatprep.mubr.bf16.mxu0 %v3753_v54  ;;  %v3286_v59 = vld [vmem:[#allocation3 + $0x144] ss:$16 sps:$4 sm:$0xff]   ;;  %v3296_v1 = vld [vmem:[#allocation3 + $0x120] ss:$16 sps:$4 sm:$0xff]  }
  0x3b   : > { %1994 = vmatprep.mubr.bf16.mxu1 %v3755_v55  ;;  %v3288_v60 = vld [vmem:[#allocation3 + $0x344] ss:$16 sps:$4 sm:$0xff]   ;;  %v3297_v2 = vld [vmem:[#allocation3 + $0x320] ss:$16 sps:$4 sm:$0xff]  }
  0x3c   : > { %1924 = vmatpush1.bf16.msra.mxu0 %v3254_v31  ;;  %v3292_v63 = vld [vmem:[#allocation3 + $0x124] ss:$16 sps:$4 sm:$0xff]   ;;  %v3302_v5 = vld [vmem:[#allocation3 + $0x100] ss:$16 sps:$4 sm:$0xff]  }
  0x3d   : > { %1977 = vmatpush1.bf16.msra.mxu1 %v3255_v32  ;;  %1925 = vmatprep.subr.bf16.mxu0 %v3256_v33  ;;  %v3294_v0 = vld [vmem:[#allocation3 + $0x324] ss:$16 sps:$4 sm:$0xff]   ;;  %v3303_v6 = vld [vmem:[#allocation3 + $0x300] ss:$16 sps:$4 sm:$0xff]  }
  0x3e   : > { %1978 = vmatprep.subr.bf16.mxu1 %v3258_v34  ;;  %v3298_v3 = vld [vmem:[#allocation3 + $0x104] ss:$16 sps:$4 sm:$0xff]   ;;  %v3304_v15 = vld [vmem:[#allocation3 + $0x4e0] ss:$16 sps:$4 sm:$0xff]  }
  0x3f   : > { %v3300_v4 = vld [vmem:[#allocation3 + $0x304] ss:$16 sps:$4 sm:$0xff]   ;;  %v3307_v16 = vld [vmem:[#allocation3 + $0x6e0] ss:$16 sps:$4 sm:$0xff]  }
  0x40   : > { %1926 = vmatpush2.bf16.msra.mxu0 %v3260_v35  ;;  %v303_v7 = vld [vmem:[%s3747_s17] sm:$0xff]  ;;  %v305_v9 = vld [vmem:[%s3747_s17 + $0x10] sm:$0xff]  ;;  %v320_v35 = vld [vmem:[%s3747_s17 + $0x88] sm:$0xff] }
  0x41   : > { %1979 = vmatpush2.bf16.msra.mxu1 %v3261_v36  ;;  %1927 = vmatprep.subr.bf16.mxu0 %v3262_v37  ;;  %v311_v8 = vld [vmem:[%s3747_s17 + $0x40] sm:$0xff]  ;;  %v313_v10 = vld [vmem:[%s3747_s17 + $0x50] sm:$0xff]  ;;  %v328_v36 = vld [vmem:[%s3747_s17 + $0xc8] sm:$0xff] }
  0x42   : > { %1980 = vmatprep.subr.bf16.mxu1 %v3264_v38  ;;  %v3306_v11 = vld [vmem:[#allocation3 + $0x4e4] ss:$16 sps:$4 sm:$0xff]   ;;  %v3763_v13 = vpack.c.bf16 %v311_v8, %v303_v7  ;;  %v3765_v14 = vpack.c.bf16 %v313_v10, %v305_v9  ;;  %v3310_v19 = vld [vmem:[#allocation3 + $0x4c0] ss:$16 sps:$4 sm:$0xff]   ;;  %v3772_v38 = vpack.c.bf16 %v328_v36, %v320_v35 }
  0x43   : > { %v3309_v12 = vld [vmem:[#allocation3 + $0x6e4] ss:$16 sps:$4 sm:$0xff]   ;;  %v3313_v20 = vld [vmem:[#allocation3 + $0x6c0] ss:$16 sps:$4 sm:$0xff]  }
  0x44   : > { %1928 = vmatpush2.bf16.msra.mxu0 %v3266_v39  ;;  %v3312_v17 = vld [vmem:[#allocation3 + $0x4c4] ss:$16 sps:$4 sm:$0xff]   ;;  %v3316_v23 = vld [vmem:[#allocation3 + $0x4a0] ss:$16 sps:$4 sm:$0xff]  }
  0x45   : > { %1981 = vmatpush2.bf16.msra.mxu1 %v3267_v40  ;;  %1929 = vmatprep.subr.bf16.mxu0 %v3268_v41  ;;  %v3315_v18 = vld [vmem:[#allocation3 + $0x6c4] ss:$16 sps:$4 sm:$0xff]   ;;  %v3319_v24 = vld [vmem:[#allocation3 + $0x6a0] ss:$16 sps:$4 sm:$0xff]  }
  0x46   : > { %1982 = vmatprep.subr.bf16.mxu1 %v3270_v42  ;;  %v3318_v21 = vld [vmem:[#allocation3 + $0x4a4] ss:$16 sps:$4 sm:$0xff]   ;;  %v3322_v27 = vld [vmem:[#allocation3 + $0x480] ss:$16 sps:$4 sm:$0xff]  }
  0x47   : > { %v3321_v22 = vld [vmem:[#allocation3 + $0x6a4] ss:$16 sps:$4 sm:$0xff]   ;;  %v3325_v28 = vld [vmem:[#allocation3 + $0x680] ss:$16 sps:$4 sm:$0xff]  }
  0x48   : > { %1930 = vmatpush2.bf16.msra.mxu0 %v3272_v43  ;;  %v3324_v25 = vld [vmem:[#allocation3 + $0x484] ss:$16 sps:$4 sm:$0xff]   ;;  %v3328_v31 = vld [vmem:[#allocation3 + $0x460] ss:$16 sps:$4 sm:$0xff]  }
  0x49   : > { %1983 = vmatpush2.bf16.msra.mxu1 %v3273_v44  ;;  %1931 = vmatprep.subr.bf16.mxu0 %v3274_v45  ;;  %v3327_v26 = vld [vmem:[#allocation3 + $0x684] ss:$16 sps:$4 sm:$0xff]   ;;  %v3331_v32 = vld [vmem:[#allocation3 + $0x660] ss:$16 sps:$4 sm:$0xff]  }
  0x4a   : > { %1984 = vmatprep.subr.bf16.mxu1 %v3276_v46  ;;  %v3330_v29 = vld [vmem:[#allocation3 + $0x464] ss:$16 sps:$4 sm:$0xff]   ;;  %v3334_v42 = vld [vmem:[#allocation3 + $0x440] ss:$16 sps:$4 sm:$0xff]  }
  0x4b   : > { %v3333_v30 = vld [vmem:[#allocation3 + $0x664] ss:$16 sps:$4 sm:$0xff]   ;;  %v3337_v45 = vld [vmem:[#allocation3 + $0x640] ss:$16 sps:$4 sm:$0xff]  }
  0x4c   : > { %1932 = vmatpush2.bf16.msra.mxu0 %v3278_v51  ;;  %v3336_v33 = vld [vmem:[#allocation3 + $0x444] ss:$16 sps:$4 sm:$0xff]   ;;  %v3340_v51 = vld [vmem:[#allocation3 + $0x420] ss:$16 sps:$4 sm:$0xff]  }
  0x4d   : > { %1985 = vmatpush2.bf16.msra.mxu1 %v3279_v52  ;;  %1933 = vmatprep.subr.bf16.mxu0 %v3280_v53  ;;  %v3339_v34 = vld [vmem:[#allocation3 + $0x644] ss:$16 sps:$4 sm:$0xff]   ;;  %v3343_v52 = vld [vmem:[#allocation3 + $0x620] ss:$16 sps:$4 sm:$0xff]  }
  0x4e   : > { %1986 = vmatprep.subr.bf16.mxu1 %v3282_v56  ;;  %v319_v37 = vld [vmem:[%s3747_s17 + $0x80] sm:$0xff]  ;;  %v322_v40 = vld [vmem:[%s3747_s17 + $0x98] sm:$0xff]  ;;  %v321_v48 = vld [vmem:[%s3747_s17 + $0x90] sm:$0xff] }
  0x4f   : > { %v327_v39 = vld [vmem:[%s3747_s17 + $0xc0] sm:$0xff]  ;;  %v330_v41 = vld [vmem:[%s3747_s17 + $0xd8] sm:$0xff]  ;;  %v329_v49 = vld [vmem:[%s3747_s17 + $0xd0] sm:$0xff] }
  0x50   : > { %1934 = vmatpush2.bf16.msra.mxu0 %v3284_v57  ;;  %v3777_v43 = vpack.c.bf16 %v327_v39, %v319_v37  ;;  %v3779_v44 = vpack.c.bf16 %v330_v41, %v322_v40  ;;  %v3342_v46 = vld [vmem:[#allocation3 + $0x424] ss:$16 sps:$4 sm:$0xff]   ;;  %v3786_v50 = vpack.c.bf16 %v329_v49, %v321_v48  ;;  %v3358_v7 = vld [vmem:[#allocation3 + $0x5c0] ss:$16 sps:$4 sm:$0xff]   ;;  %v3402_v40 = vld [vmem:[#allocation3 + $0xec] ss:$16 sps:$4 sm:$0xff]  }
  0x51   : > { %1987 = vmatpush2.bf16.msra.mxu1 %v3285_v58  ;;  %1935 = vmatprep.subr.bf16.mxu0 %v3286_v59  ;;  %v3345_v47 = vld [vmem:[#allocation3 + $0x624] ss:$16 sps:$4 sm:$0xff]   ;;  %v3361_v8 = vld [vmem:[#allocation3 + $0x7c0] ss:$16 sps:$4 sm:$0xff]   ;;  %v3405_v41 = vld [vmem:[#allocation3 + $0x2ec] ss:$16 sps:$4 sm:$0xff]  }
  0x52   : > { %1988 = vmatprep.subr.bf16.mxu1 %v3288_v60  ;;  %v3348_v53 = vld [vmem:[#allocation3 + $0x404] ss:$16 sps:$4 sm:$0xff]  }
  0x53   : > { %v3351_v56 = vld [vmem:[#allocation3 + $0x604] ss:$16 sps:$4 sm:$0xff]  }
  0x54   : > { %1936 = vmatpush2.bf16.msra.mxu0 %v3290_v61  ;;  %v308_v57 = vld [vmem:[%s3747_s17 + $0x28] sm:$0xff]  ;;  %v310_v59 = vld [vmem:[%s3747_s17 + $0x38] sm:$0xff]  ;;  %v3346_v61 = vld [vmem:[#allocation3 + $0x400] ss:$16 sps:$4 sm:$0xff]  }
  0x55   : > { %1989 = vmatpush2.bf16.msra.mxu1 %v3291_v62  ;;  %1937 = vmatprep.subr.bf16.mxu0 %v3292_v63  ;;  %v316_v58 = vld [vmem:[%s3747_s17 + $0x68] sm:$0xff]  ;;  %v318_v60 = vld [vmem:[%s3747_s17 + $0x78] sm:$0xff]  ;;  %v3349_v62 = vld [vmem:[#allocation3 + $0x600] ss:$16 sps:$4 sm:$0xff]  }
  0x56   : > { %1990 = vmatprep.subr.bf16.mxu1 %v3294_v0  ;;  %v3354_v63 = vld [vmem:[#allocation3 + $0x5e4] ss:$16 sps:$4 sm:$0xff]   ;;  %v3793_v0 = vpack.c.bf16 %v316_v58, %v308_v57  ;;  %v3406_v57 = vld [vmem:[#allocation3 + $0xc8] ss:$16 sps:$4 sm:$0xff]  }
  0x57   : > { %v3366_v9 = vld [vmem:[#allocation3 + $0x5a4] ss:$16 sps:$4 sm:$0xff]   ;;  %v3409_v58 = vld [vmem:[#allocation3 + $0x2c8] ss:$16 sps:$4 sm:$0xff]  }
  0x58   : > { %1938 = vmatpush2.bf16.msra.mxu0 %v3296_v1  ;;  %v3795_v1 = vpack.c.bf16 %v318_v60, %v310_v59  ;;  %v3369_v10 = vld [vmem:[#allocation3 + $0x7a4] ss:$16 sps:$4 sm:$0xff]  }
  0x59   : > { %1991 = vmatpush2.bf16.msra.mxu1 %v3297_v2  ;;  %1939 = vmatprep.subr.bf16.mxu0 %v3298_v3  ;;  %v3357_v2 = vld [vmem:[#allocation3 + $0x7e4] ss:$16 sps:$4 sm:$0xff]   ;;  %v3352_v3 = vld [vmem:[#allocation3 + $0x5e0] ss:$16 sps:$4 sm:$0xff]  }
  0x5a   : > { %1992 = vmatprep.subr.bf16.mxu1 %v3300_v4  ;;  %v3355_v4 = vld [vmem:[#allocation3 + $0x7e0] ss:$16 sps:$4 sm:$0xff]  }
  0x5b   : > { %v307_v35 = vld [vmem:[%s3747_s17 + $0x20] sm:$0xff]  ;;  %v309_v37 = vld [vmem:[%s3747_s17 + $0x30] sm:$0xff] }
  0x5c   : > { %1940 = vmatpush2.bf16.msra.mxu0 %v3302_v5  ;;  %v3360_v5 = vld [vmem:[#allocation3 + $0x5c4] ss:$16 sps:$4 sm:$0xff]  }
  0x5d   : > { %1993 = vmatpush2.bf16.msra.mxu1 %v3303_v6  ;;  %2015 = vmatprep.subr.bf16.mxu0 %v3306_v11  ;;  %v3363_v6 = vld [vmem:[#allocation3 + $0x7c4] ss:$16 sps:$4 sm:$0xff]   ;;  %v3364_v11 = vld [vmem:[#allocation3 + $0x5a0] ss:$16 sps:$4 sm:$0xff]  }
  0x5e   : > { %2068 = vmatprep.subr.bf16.mxu1 %v3309_v12  ;;  %v3367_v12 = vld [vmem:[#allocation3 + $0x7a0] ss:$16 sps:$4 sm:$0xff]  }
  0x5f   : > { %1942 = vmatmul.mubr.bf16.vlgmr.msra.gmra.mxu0 %v3763_v13  ;;  %v315_v36 = vld [vmem:[%s3747_s17 + $0x60] sm:$0xff]  ;;  %v317_v39 = vld [vmem:[%s3747_s17 + $0x70] sm:$0xff] }
  0x60   : > { %1995 = vmatmul.mubr.bf16.vlgmr.msra.gmra.mxu1 %v3765_v14  ;;  %2016 = vmatpush1.bf16.msra.mxu0 %v3304_v15  ;;  %v3372_v15 = vld [vmem:[#allocation3 + $0x584] ss:$16 sps:$4 sm:$0xff]   ;;  %v3805_v48 = vpack.c.bf16 %v315_v36, %v307_v35  ;;  %v3807_v49 = vpack.c.bf16 %v317_v39, %v309_v37  ;;  %v3454_v35 = vld [vmem:[#allocation3 + $0x1c8] ss:$16 sps:$4 sm:$0xff]   ;;  %v3462_v37 = vld [vmem:[#allocation3 + $0x1ac] ss:$16 sps:$4 sm:$0xff]  }
  0x61   : > { %2069 = vmatpush1.bf16.msra.mxu1 %v3307_v16  ;;  %2017 = vmatprep.subr.bf16.mxu0 %v3312_v17  ;;  %v3375_v16 = vld [vmem:[#allocation3 + $0x784] ss:$16 sps:$4 sm:$0xff]   ;;  %v3370_v17 = vld [vmem:[#allocation3 + $0x580] ss:$16 sps:$4 sm:$0xff]   ;;  %v3457_v36 = vld [vmem:[#allocation3 + $0x3c8] ss:$16 sps:$4 sm:$0xff]  }
  0x62   : > { %2070 = vmatprep.subr.bf16.mxu1 %v3315_v18  ;;  %1951 = vmatprep.mubr.bf16.mxu0 %v3772_v38  ;;  %v3373_v18 = vld [vmem:[#allocation3 + $0x780] ss:$16 sps:$4 sm:$0xff]   ;;  %v3465_v39 = vld [vmem:[#allocation3 + $0x3ac] ss:$16 sps:$4 sm:$0xff]  }
  0x63   : > { %2004 = vmatprep.mubr.bf16.mxu1 %v3779_v44  ;;  %v323_v60 = vld [vmem:[%s3747_s17 + $0xa0] sm:$0xff] }
  0x64   : > { %2018 = vmatpush1.bf16.msra.mxu0 %v3310_v19  ;;  %v3378_v19 = vld [vmem:[#allocation3 + $0x564] ss:$16 sps:$4 sm:$0xff]  }
  0x65   : > { %2071 = vmatpush1.bf16.msra.mxu1 %v3313_v20  ;;  %2019 = vmatprep.subr.bf16.mxu0 %v3318_v21  ;;  %v3381_v20 = vld [vmem:[#allocation3 + $0x764] ss:$16 sps:$4 sm:$0xff]   ;;  %v3376_v21 = vld [vmem:[#allocation3 + $0x560] ss:$16 sps:$4 sm:$0xff]  }
  0x66   : > { %2072 = vmatprep.subr.bf16.mxu1 %v3321_v22  ;;  %v3379_v22 = vld [vmem:[#allocation3 + $0x760] ss:$16 sps:$4 sm:$0xff]  }
  0x67   : > { %1952 = vmatmul.mubr.bf16.gmra.mxu0 %v3777_v43 }
  0x68   : > { %2020 = vmatpush1.bf16.msra.mxu0 %v3316_v23  ;;  %2005 = vmatmul.mubr.bf16.gmra.mxu1 %v3786_v50  ;;  %v3384_v23 = vld [vmem:[#allocation3 + $0x544] ss:$16 sps:$4 sm:$0xff]  }
  0x69   : > { %2073 = vmatpush1.bf16.msra.mxu1 %v3319_v24  ;;  %2021 = vmatprep.subr.bf16.mxu0 %v3324_v25  ;;  %v3387_v24 = vld [vmem:[#allocation3 + $0x744] ss:$16 sps:$4 sm:$0xff]   ;;  %v3382_v25 = vld [vmem:[#allocation3 + $0x540] ss:$16 sps:$4 sm:$0xff]  }
  0x6a   : > { %2074 = vmatprep.subr.bf16.mxu1 %v3327_v26  ;;  %2047 = vmatprep.mubr.bf16.mxu0 %v3793_v0  ;;  %v3385_v26 = vld [vmem:[#allocation3 + $0x740] ss:$16 sps:$4 sm:$0xff]  }
  0x6b   : > { %2100 = vmatprep.mubr.bf16.mxu1 %v3795_v1 }
  0x6c   : > { %2022 = vmatpush1.bf16.msra.mxu0 %v3322_v27  ;;  %v3390_v27 = vld [vmem:[#allocation3 + $0x524] ss:$16 sps:$4 sm:$0xff]  }
  0x6d   : > { %2075 = vmatpush1.bf16.msra.mxu1 %v3325_v28  ;;  %2023 = vmatprep.subr.bf16.mxu0 %v3330_v29  ;;  %v3393_v28 = vld [vmem:[#allocation3 + $0x724] ss:$16 sps:$4 sm:$0xff]   ;;  %v3388_v29 = vld [vmem:[#allocation3 + $0x520] ss:$16 sps:$4 sm:$0xff]  }
  0x6e   : > { %2076 = vmatprep.subr.bf16.mxu1 %v3333_v30  ;;  %v3391_v30 = vld [vmem:[#allocation3 + $0x720] ss:$16 sps:$4 sm:$0xff]  }
  0x70   : > { %2024 = vmatpush1.bf16.msra.mxu0 %v3328_v31  ;;  %v3396_v31 = vld [vmem:[#allocation3 + $0x504] ss:$16 sps:$4 sm:$0xff]  }
  0x71   : > { %2077 = vmatpush1.bf16.msra.mxu1 %v3331_v32  ;;  %2025 = vmatprep.subr.bf16.mxu0 %v3336_v33  ;;  %v3399_v32 = vld [vmem:[#allocation3 + $0x704] ss:$16 sps:$4 sm:$0xff]   ;;  %v3394_v33 = vld [vmem:[#allocation3 + $0x500] ss:$16 sps:$4 sm:$0xff]  }
  0x72   : > { %2078 = vmatprep.subr.bf16.mxu1 %v3339_v34  ;;  %v3397_v34 = vld [vmem:[#allocation3 + $0x700] ss:$16 sps:$4 sm:$0xff]  }
  0x74   : > { %2026 = vmatpush1.bf16.msra.mxu0 %v3334_v42  ;;  %v3400_v42 = vld [vmem:[#allocation3 + $0xe8] ss:$16 sps:$4 sm:$0xff]  }
  0x75   : > { %2079 = vmatpush1.bf16.msra.mxu1 %v3337_v45  ;;  %2027 = vmatprep.subr.bf16.mxu0 %v3342_v46  ;;  %v3403_v45 = vld [vmem:[#allocation3 + $0x2e8] ss:$16 sps:$4 sm:$0xff]  }
  0x76   : > { %2080 = vmatprep.subr.bf16.mxu1 %v3345_v47  ;;  %v324_v46 = vld [vmem:[%s3747_s17 + $0xa8] sm:$0xff] }
  0x77   : > { %v332_v47 = vld [vmem:[%s3747_s17 + $0xe8] sm:$0xff] }
  0x78   : > { %2028 = vmatpush1.bf16.msra.mxu0 %v3340_v51  ;;  %v326_v51 = vld [vmem:[%s3747_s17 + $0xb8] sm:$0xff]  ;;  %v3811_v59 = vpack.c.bf16 %v332_v47, %v324_v46 }
  0x79   : > { %2081 = vmatpush1.bf16.msra.mxu1 %v3343_v52  ;;  %2029 = vmatprep.subr.bf16.mxu0 %v3348_v53  ;;  %v334_v52 = vld [vmem:[%s3747_s17 + $0xf8] sm:$0xff] }
  0x7a   : > { %2082 = vmatprep.subr.bf16.mxu1 %v3351_v56  ;;  %v3408_v53 = vld [vmem:[#allocation3 + $0xcc] ss:$16 sps:$4 sm:$0xff]   ;;  %v3466_v46 = vld [vmem:[#allocation3 + $0x188] ss:$16 sps:$4 sm:$0xff]  }
  0x7b   : > { %v3411_v56 = vld [vmem:[#allocation3 + $0x2cc] ss:$16 sps:$4 sm:$0xff]   ;;  %v3469_v47 = vld [vmem:[#allocation3 + $0x388] ss:$16 sps:$4 sm:$0xff]  }
  0x7c   : > { %2030 = vmatpush1.bf16.msra.mxu0 %v3346_v61  ;;  %v331_v61 = vld [vmem:[%s3747_s17 + $0xe0] sm:$0xff] }
  0x7d   : > { %2083 = vmatpush1.bf16.msra.mxu1 %v3349_v62  ;;  %2031 = vmatprep.subr.bf16.mxu0 %v3354_v63  ;;  %v3815_v62 = vpack.c.bf16 %v334_v52, %v326_v51  ;;  %v3414_v63 = vld [vmem:[#allocation3 + $0xac] ss:$16 sps:$4 sm:$0xff]  }
  0x7e   : > { %2084 = vmatprep.subr.bf16.mxu1 %v3357_v2  ;;  %v325_v2 = vld [vmem:[%s3747_s17 + $0xb0] sm:$0xff] }
  0x7f   : > { %v3474_v51 = vld [vmem:[#allocation3 + $0x16c] ss:$16 sps:$4 sm:$0xff]  }
  0x80   : > { %2032 = vmatpush2.bf16.msra.mxu0 %v3352_v3  ;;  %v333_v3 = vld [vmem:[%s3747_s17 + $0xf0] sm:$0xff] }
  0x81   : > { %2085 = vmatpush2.bf16.msra.mxu1 %v3355_v4  ;;  %2033 = vmatprep.subr.bf16.mxu0 %v3360_v5  ;;  %v3417_v4 = vld [vmem:[#allocation3 + $0x2ac] ss:$16 sps:$4 sm:$0xff]   ;;  %v3823_v5 = vpack.c.bf16 %v331_v61, %v323_v60  ;;  %v3478_v60 = vld [vmem:[#allocation3 + $0x148] ss:$16 sps:$4 sm:$0xff]  }
  0x82   : > { %2086 = vmatprep.subr.bf16.mxu1 %v3363_v6  ;;  %v3412_v6 = vld [vmem:[#allocation3 + $0xa8] ss:$16 sps:$4 sm:$0xff]   ;;  %v3477_v52 = vld [vmem:[#allocation3 + $0x36c] ss:$16 sps:$4 sm:$0xff]  }
  0x83   : > { %v3481_v61 = vld [vmem:[#allocation3 + $0x348] ss:$16 sps:$4 sm:$0xff]  }
  0x84   : > { %2034 = vmatpush2.bf16.msra.mxu0 %v3358_v7  ;;  %v3415_v7 = vld [vmem:[#allocation3 + $0x2a8] ss:$16 sps:$4 sm:$0xff]  }
  0x85   : > { %2087 = vmatpush2.bf16.msra.mxu1 %v3361_v8  ;;  %2035 = vmatprep.subr.bf16.mxu0 %v3366_v9  ;;  %v3825_v8 = vpack.c.bf16 %v333_v3, %v325_v2  ;;  %v3420_v9 = vld [vmem:[#allocation3 + $0x8c] ss:$16 sps:$4 sm:$0xff]   ;;  %v3484_v3 = vld [vmem:[#allocation3 + $0x128] ss:$16 sps:$4 sm:$0xff]  }
  0x86   : > { %2088 = vmatprep.subr.bf16.mxu1 %v3369_v10  ;;  %v3423_v10 = vld [vmem:[#allocation3 + $0x28c] ss:$16 sps:$4 sm:$0xff]  }
  0x87   : > { %v3489_v2 = vld [vmem:[#allocation3 + $0x32c] ss:$16 sps:$4 sm:$0xff]  }
  0x88   : > { %2036 = vmatpush2.bf16.msra.mxu0 %v3364_v11  ;;  %v3418_v11 = vld [vmem:[#allocation3 + $0x88] ss:$16 sps:$4 sm:$0xff]  }
  0x89   : > { %2089 = vmatpush2.bf16.msra.mxu1 %v3367_v12  ;;  %2037 = vmatprep.subr.bf16.mxu0 %v3372_v15  ;;  %v3421_v12 = vld [vmem:[#allocation3 + $0x288] ss:$16 sps:$4 sm:$0xff]   ;;  %v3426_v15 = vld [vmem:[#allocation3 + $0x6c] ss:$16 sps:$4 sm:$0xff]  }
  0x8a   : > { %2090 = vmatprep.subr.bf16.mxu1 %v3375_v16  ;;  %v3429_v16 = vld [vmem:[#allocation3 + $0x26c] ss:$16 sps:$4 sm:$0xff]  }
  0x8c   : > { %2038 = vmatpush2.bf16.msra.mxu0 %v3370_v17  ;;  %v3424_v17 = vld [vmem:[#allocation3 + $0x68] ss:$16 sps:$4 sm:$0xff]  }
  0x8d   : > { %2091 = vmatpush2.bf16.msra.mxu1 %v3373_v18  ;;  %2039 = vmatprep.subr.bf16.mxu0 %v3378_v19  ;;  %v3427_v18 = vld [vmem:[#allocation3 + $0x268] ss:$16 sps:$4 sm:$0xff]   ;;  %v3432_v19 = vld [vmem:[#allocation3 + $0x4c] ss:$16 sps:$4 sm:$0xff]  }
  0x8e   : > { %2092 = vmatprep.subr.bf16.mxu1 %v3381_v20  ;;  %v3435_v20 = vld [vmem:[#allocation3 + $0x24c] ss:$16 sps:$4 sm:$0xff]  }
  0x90   : > { %2040 = vmatpush2.bf16.msra.mxu0 %v3376_v21  ;;  %v3430_v21 = vld [vmem:[#allocation3 + $0x48] ss:$16 sps:$4 sm:$0xff]  }
  0x91   : > { %2093 = vmatpush2.bf16.msra.mxu1 %v3379_v22  ;;  %2041 = vmatprep.subr.bf16.mxu0 %v3384_v23  ;;  %v3433_v22 = vld [vmem:[#allocation3 + $0x248] ss:$16 sps:$4 sm:$0xff]   ;;  %v3438_v23 = vld [vmem:[#allocation3 + $0x2c] ss:$16 sps:$4 sm:$0xff]  }
  0x92   : > { %2094 = vmatprep.subr.bf16.mxu1 %v3387_v24  ;;  %v3441_v24 = vld [vmem:[#allocation3 + $0x22c] ss:$16 sps:$4 sm:$0xff]  }
  0x94   : > { %2042 = vmatpush2.bf16.msra.mxu0 %v3382_v25  ;;  %v3436_v25 = vld [vmem:[#allocation3 + $0x28] ss:$16 sps:$4 sm:$0xff]  }
  0x95   : > { %2095 = vmatpush2.bf16.msra.mxu1 %v3385_v26  ;;  %2043 = vmatprep.subr.bf16.mxu0 %v3390_v27  ;;  %v3447_v26 = vld [vmem:[#allocation3 + $0x20c] ss:$16 sps:$4 sm:$0xff]   ;;  %v3442_v27 = vld [vmem:[#allocation3 + $0x8] ss:$16 sps:$4 sm:$0xff]  }
  0x96   : > { %2096 = vmatprep.subr.bf16.mxu1 %v3393_v28  ;;  %v3445_v28 = vld [vmem:[#allocation3 + $0x208] ss:$16 sps:$4 sm:$0xff]  }
  0x98   : > { %2044 = vmatpush2.bf16.msra.mxu0 %v3388_v29  ;;  %v3450_v29 = vld [vmem:[#allocation3 + $0x1ec] ss:$16 sps:$4 sm:$0xff]  }
  0x99   : > { %2097 = vmatpush2.bf16.msra.mxu1 %v3391_v30  ;;  %2045 = vmatprep.subr.bf16.mxu0 %v3396_v31  ;;  %v3453_v30 = vld [vmem:[#allocation3 + $0x3ec] ss:$16 sps:$4 sm:$0xff]   ;;  %v3448_v31 = vld [vmem:[#allocation3 + $0x1e8] ss:$16 sps:$4 sm:$0xff]  }
  0x9a   : > { %2098 = vmatprep.subr.bf16.mxu1 %v3399_v32  ;;  %v3451_v32 = vld [vmem:[#allocation3 + $0x3e8] ss:$16 sps:$4 sm:$0xff]  }
  0x9c   : > { %2046 = vmatpush2.bf16.msra.mxu0 %v3394_v33  ;;  %v3456_v33 = vld [vmem:[#allocation3 + $0x1cc] ss:$16 sps:$4 sm:$0xff]  }
  0x9d   : > { %2099 = vmatpush2.bf16.msra.mxu1 %v3397_v34  ;;  %2121 = vmatprep.subr.bf16.mxu0 %v3402_v40  ;;  %v3459_v34 = vld [vmem:[#allocation3 + $0x3cc] ss:$16 sps:$4 sm:$0xff]   ;;  %v3460_v40 = vld [vmem:[#allocation3 + $0x1a8] ss:$16 sps:$4 sm:$0xff]  }
  0x9e   : > { %2174 = vmatprep.subr.bf16.mxu1 %v3405_v41  ;;  %v3463_v41 = vld [vmem:[#allocation3 + $0x3a8] ss:$16 sps:$4 sm:$0xff]  }
  0x9f   : > { %2048 = vmatmul.mubr.bf16.vlgmr.msra.gmra.mxu0 %v3805_v48 }
  0xa0   : > { %2101 = vmatmul.mubr.bf16.vlgmr.msra.gmra.mxu1 %v3807_v49  ;;  %2122 = vmatpush1.bf16.msra.mxu0 %v3400_v42  ;;  %v3468_v42 = vld [vmem:[#allocation3 + $0x18c] ss:$16 sps:$4 sm:$0xff]  }
  0xa1   : > { %2175 = vmatpush1.bf16.msra.mxu1 %v3403_v45  ;;  %2123 = vmatprep.subr.bf16.mxu0 %v3408_v53  ;;  %v3471_v45 = vld [vmem:[#allocation3 + $0x38c] ss:$16 sps:$4 sm:$0xff]   ;;  %v3472_v53 = vld [vmem:[#allocation3 + $0x168] ss:$16 sps:$4 sm:$0xff]  }
  0xa2   : > { %2176 = vmatprep.subr.bf16.mxu1 %v3411_v56  ;;  %2057 = vmatprep.mubr.bf16.mxu0 %v3811_v59  ;;  %v3475_v56 = vld [vmem:[#allocation3 + $0x368] ss:$16 sps:$4 sm:$0xff]  }
  0xa3   : > { %2110 = vmatprep.mubr.bf16.mxu1 %v3815_v62 }
  0xa4   : > { %2124 = vmatpush1.bf16.msra.mxu0 %v3406_v57  ;;  %v3480_v57 = vld [vmem:[#allocation3 + $0x14c] ss:$16 sps:$4 sm:$0xff]  }
  0xa5   : > { %2177 = vmatpush1.bf16.msra.mxu1 %v3409_v58  ;;  %2125 = vmatprep.subr.bf16.mxu0 %v3414_v63  ;;  %v3483_v58 = vld [vmem:[#allocation3 + $0x34c] ss:$16 sps:$4 sm:$0xff]  }
  0xa6   : > { %2178 = vmatprep.subr.bf16.mxu1 %v3417_v4  ;;  %v3486_v63 = vld [vmem:[#allocation3 + $0x12c] ss:$16 sps:$4 sm:$0xff]   ;;  %v3487_v4 = vld [vmem:[#allocation3 + $0x328] ss:$16 sps:$4 sm:$0xff]  }
  0xa7   : > { %2058 = vmatmul.mubr.bf16.gmra.mxu0 %v3823_v5 }
  0xa8   : > { %2111 = vmatmul.mubr.bf16.gmra.mxu1 %v3825_v8  ;;  %2126 = vmatpush1.bf16.msra.mxu0 %v3412_v6  ;;  %v3492_v6 = vld [vmem:[#allocation3 + $0x10c] ss:$16 sps:$4 sm:$0xff]  }
  0xa9   : > { %2179 = vmatpush1.bf16.msra.mxu1 %v3415_v7  ;;  %2127 = vmatprep.subr.bf16.mxu0 %v3420_v9  ;;  %v3495_v7 = vld [vmem:[#allocation3 + $0x30c] ss:$16 sps:$4 sm:$0xff]   ;;  %v3490_v9 = vld [vmem:[#allocation3 + $0x108] ss:$16 sps:$4 sm:$0xff]  }
  0xaa   : > { %2180 = vmatprep.subr.bf16.mxu1 %v3423_v10  ;;  %2153 = vmatprep.mubr.bf16.mxu0 %v3753_v54  ;;  %v3439_v54 = vld [vmem:[#allocation3 + $0x228] ss:$16 sps:$4 sm:$0xff]  }
  0xab   : > { %2206 = vmatprep.mubr.bf16.mxu1 %v3755_v55  ;;  %v3444_v55 = vld [vmem:[#allocation3 + $0xc] ss:$16 sps:$4 sm:$0xff]   ;;  %v3493_v10 = vld [vmem:[#allocation3 + $0x308] ss:$16 sps:$4 sm:$0xff]  }
  0xac   : > { %2128 = vmatpush1.bf16.msra.mxu0 %v3418_v11  ;;  %v3498_v11 = vld [vmem:[#allocation3 + $0x4ec] ss:$16 sps:$4 sm:$0xff]  }
  0xad   : > { %2181 = vmatpush1.bf16.msra.mxu1 %v3421_v12  ;;  %2129 = vmatprep.subr.bf16.mxu0 %v3426_v15  ;;  %v3501_v12 = vld [vmem:[#allocation3 + $0x6ec] ss:$16 sps:$4 sm:$0xff]   ;;  %v3496_v15 = vld [vmem:[#allocation3 + $0x4e8] ss:$16 sps:$4 sm:$0xff]  }
  0xae   : > { %2182 = vmatprep.subr.bf16.mxu1 %v3429_v16  ;;  %v3499_v16 = vld [vmem:[#allocation3 + $0x6e8] ss:$16 sps:$4 sm:$0xff]  }
  0xb0   : > { %2130 = vmatpush1.bf16.msra.mxu0 %v3424_v17  ;;  %v3504_v17 = vld [vmem:[#allocation3 + $0x4cc] ss:$16 sps:$4 sm:$0xff]  }
  0xb1   : > { %2183 = vmatpush1.bf16.msra.mxu1 %v3427_v18  ;;  %2131 = vmatprep.subr.bf16.mxu0 %v3432_v19  ;;  %v3507_v18 = vld [vmem:[#allocation3 + $0x6cc] ss:$16 sps:$4 sm:$0xff]   ;;  %v3502_v19 = vld [vmem:[#allocation3 + $0x4c8] ss:$16 sps:$4 sm:$0xff]  }
  0xb2   : > { %2184 = vmatprep.subr.bf16.mxu1 %v3435_v20  ;;  %v3505_v20 = vld [vmem:[#allocation3 + $0x6c8] ss:$16 sps:$4 sm:$0xff]  }
  0xb4   : > { %2132 = vmatpush1.bf16.msra.mxu0 %v3430_v21  ;;  %v3510_v21 = vld [vmem:[#allocation3 + $0x4ac] ss:$16 sps:$4 sm:$0xff]  }
  0xb5   : > { %2185 = vmatpush1.bf16.msra.mxu1 %v3433_v22  ;;  %2133 = vmatprep.subr.bf16.mxu0 %v3438_v23  ;;  %v3513_v22 = vld [vmem:[#allocation3 + $0x6ac] ss:$16 sps:$4 sm:$0xff]   ;;  %v3508_v23 = vld [vmem:[#allocation3 + $0x4a8] ss:$16 sps:$4 sm:$0xff]  }
  0xb6   : > { %2186 = vmatprep.subr.bf16.mxu1 %v3441_v24  ;;  %v3511_v24 = vld [vmem:[#allocation3 + $0x6a8] ss:$16 sps:$4 sm:$0xff]  }
  0xb8   : > { %2134 = vmatpush1.bf16.msra.mxu0 %v3436_v25  ;;  %v3516_v25 = vld [vmem:[#allocation3 + $0x48c] ss:$16 sps:$4 sm:$0xff]  }
  0xb9   : > { %2187 = vmatpush1.bf16.msra.mxu1 %v3439_v54  ;;  %2135 = vmatprep.subr.bf16.mxu0 %v3444_v55  ;;  %v3514_v54 = vld [vmem:[#allocation3 + $0x488] ss:$16 sps:$4 sm:$0xff]   ;;  %v3522_v55 = vld [vmem:[#allocation3 + $0x46c] ss:$16 sps:$4 sm:$0xff]  }
  0xba   : > { %2188 = vmatprep.subr.bf16.mxu1 %v3447_v26  ;;  %v3523_v26 = vld [vmem:[#allocation3 + $0x668] ss:$16 sps:$4 sm:$0xff]  }
  0xbc   : > { %2136 = vmatpush1.bf16.msra.mxu0 %v3442_v27  ;;  %v3528_v27 = vld [vmem:[#allocation3 + $0x44c] ss:$16 sps:$4 sm:$0xff]  }
  0xbd   : > { %2189 = vmatpush1.bf16.msra.mxu1 %v3445_v28  ;;  %2137 = vmatprep.subr.bf16.mxu0 %v3450_v29  ;;  %v3531_v28 = vld [vmem:[#allocation3 + $0x64c] ss:$16 sps:$4 sm:$0xff]  }
  0xbe   : > { %2190 = vmatprep.subr.bf16.mxu1 %v3453_v30  ;;  %v3534_v29 = vld [vmem:[#allocation3 + $0x42c] ss:$16 sps:$4 sm:$0xff]  }
  0xbf   : > { %v3537_v30 = vld [vmem:[#allocation3 + $0x62c] ss:$16 sps:$4 sm:$0xff]  }
  0xc0   : > { %2138 = vmatpush2.bf16.msra.mxu0 %v3448_v31  ;;  %v3540_v31 = vld [vmem:[#allocation3 + $0x40c] ss:$16 sps:$4 sm:$0xff]  }
  0xc1   : > { %2191 = vmatpush2.bf16.msra.mxu1 %v3451_v32  ;;  %2139 = vmatprep.subr.bf16.mxu0 %v3456_v33  ;;  %v3543_v32 = vld [vmem:[#allocation3 + $0x60c] ss:$16 sps:$4 sm:$0xff]   ;;  %v3538_v33 = vld [vmem:[#allocation3 + $0x408] ss:$16 sps:$4 sm:$0xff]  }
  0xc2   : > { %2192 = vmatprep.subr.bf16.mxu1 %v3459_v34  ;;  %v3541_v34 = vld [vmem:[#allocation3 + $0x608] ss:$16 sps:$4 sm:$0xff]  }
  0xc4   : > { %2140 = vmatpush2.bf16.msra.mxu0 %v3454_v35  ;;  %v3546_v35 = vld [vmem:[#allocation3 + $0x5ec] ss:$16 sps:$4 sm:$0xff]  }
  0xc5   : > { %2193 = vmatpush2.bf16.msra.mxu1 %v3457_v36  ;;  %2141 = vmatprep.subr.bf16.mxu0 %v3462_v37  ;;  %v3549_v36 = vld [vmem:[#allocation3 + $0x7ec] ss:$16 sps:$4 sm:$0xff]   ;;  %v3544_v37 = vld [vmem:[#allocation3 + $0x5e8] ss:$16 sps:$4 sm:$0xff]  }
  0xc6   : > { %2194 = vmatprep.subr.bf16.mxu1 %v3465_v39  ;;  %v3547_v39 = vld [vmem:[#allocation3 + $0x7e8] ss:$16 sps:$4 sm:$0xff]  }
  0xc8   : > { %2142 = vmatpush2.bf16.msra.mxu0 %v3460_v40  ;;  %v3552_v40 = vld [vmem:[#allocation3 + $0x5cc] ss:$16 sps:$4 sm:$0xff]  }
  0xc9   : > { %2195 = vmatpush2.bf16.msra.mxu1 %v3463_v41  ;;  %2143 = vmatprep.subr.bf16.mxu0 %v3468_v42  ;;  %v3555_v41 = vld [vmem:[#allocation3 + $0x7cc] ss:$16 sps:$4 sm:$0xff]   ;;  %v3550_v42 = vld [vmem:[#allocation3 + $0x5c8] ss:$16 sps:$4 sm:$0xff]  }
  0xca   : > { %2196 = vmatprep.subr.bf16.mxu1 %v3471_v45  ;;  %v3553_v45 = vld [vmem:[#allocation3 + $0x7c8] ss:$16 sps:$4 sm:$0xff]  }
  0xcc   : > { %2144 = vmatpush2.bf16.msra.mxu0 %v3466_v46  ;;  %v3558_v46 = vld [vmem:[#allocation3 + $0x5ac] ss:$16 sps:$4 sm:$0xff]  }
  0xcd   : > { %2197 = vmatpush2.bf16.msra.mxu1 %v3469_v47  ;;  %2145 = vmatprep.subr.bf16.mxu0 %v3474_v51  ;;  %v3561_v47 = vld [vmem:[#allocation3 + $0x7ac] ss:$16 sps:$4 sm:$0xff]   ;;  %v3556_v51 = vld [vmem:[#allocation3 + $0x5a8] ss:$16 sps:$4 sm:$0xff]  }
  0xce   : > { %2198 = vmatprep.subr.bf16.mxu1 %v3477_v52  ;;  %v3559_v52 = vld [vmem:[#allocation3 + $0x7a8] ss:$16 sps:$4 sm:$0xff]  }
  0xd0   : > { %2146 = vmatpush2.bf16.msra.mxu0 %v3472_v53  ;;  %v3564_v53 = vld [vmem:[#allocation3 + $0x58c] ss:$16 sps:$4 sm:$0xff]  }
  0xd1   : > { %2199 = vmatpush2.bf16.msra.mxu1 %v3475_v56  ;;  %2147 = vmatprep.subr.bf16.mxu0 %v3480_v57  ;;  %v3567_v56 = vld [vmem:[#allocation3 + $0x78c] ss:$16 sps:$4 sm:$0xff]   ;;  %v3562_v57 = vld [vmem:[#allocation3 + $0x588] ss:$16 sps:$4 sm:$0xff]  }
  0xd2   : > { %2200 = vmatprep.subr.bf16.mxu1 %v3483_v58  ;;  %v3565_v58 = vld [vmem:[#allocation3 + $0x788] ss:$16 sps:$4 sm:$0xff]  }
  0xd4   : > { %2148 = vmatpush2.bf16.msra.mxu0 %v3478_v60  ;;  %v3570_v60 = vld [vmem:[#allocation3 + $0x56c] ss:$16 sps:$4 sm:$0xff]  }
  0xd5   : > { %2201 = vmatpush2.bf16.msra.mxu1 %v3481_v61  ;;  %2149 = vmatprep.subr.bf16.mxu0 %v3486_v63  ;;  %v3573_v61 = vld [vmem:[#allocation3 + $0x76c] ss:$16 sps:$4 sm:$0xff]   ;;  %v3568_v63 = vld [vmem:[#allocation3 + $0x568] ss:$16 sps:$4 sm:$0xff]  }
  0xd6   : > { %2202 = vmatprep.subr.bf16.mxu1 %v3489_v2  ;;  %v3571_v2 = vld [vmem:[#allocation3 + $0x768] ss:$16 sps:$4 sm:$0xff]  }
  0xd8   : > { %2150 = vmatpush2.bf16.msra.mxu0 %v3484_v3  ;;  %v3576_v3 = vld [vmem:[#allocation3 + $0x54c] ss:$16 sps:$4 sm:$0xff]  }
  0xd9   : > { %2203 = vmatpush2.bf16.msra.mxu1 %v3487_v4  ;;  %2151 = vmatprep.subr.bf16.mxu0 %v3492_v6  ;;  %v3579_v4 = vld [vmem:[#allocation3 + $0x74c] ss:$16 sps:$4 sm:$0xff]   ;;  %v3574_v6 = vld [vmem:[#allocation3 + $0x548] ss:$16 sps:$4 sm:$0xff]  }
  0xda   : > { %2204 = vmatprep.subr.bf16.mxu1 %v3495_v7  ;;  %v3577_v7 = vld [vmem:[#allocation3 + $0x748] ss:$16 sps:$4 sm:$0xff]  }
  0xdc   : > { %2152 = vmatpush2.bf16.msra.mxu0 %v3490_v9  ;;  %v3582_v9 = vld [vmem:[#allocation3 + $0x52c] ss:$16 sps:$4 sm:$0xff]  }
  0xdd   : > { %2205 = vmatpush2.bf16.msra.mxu1 %v3493_v10  ;;  %2227 = vmatprep.subr.bf16.mxu0 %v3498_v11  ;;  %v3585_v10 = vld [vmem:[#allocation3 + $0x72c] ss:$16 sps:$4 sm:$0xff]   ;;  %v3580_v11 = vld [vmem:[#allocation3 + $0x528] ss:$16 sps:$4 sm:$0xff]  }
  0xde   : > { %2280 = vmatprep.subr.bf16.mxu1 %v3501_v12  ;;  %v3583_v12 = vld [vmem:[#allocation3 + $0x728] ss:$16 sps:$4 sm:$0xff]  }
  0xdf   : > { %2154 = vmatmul.mubr.bf16.vlgmr.msra.gmra.mxu0 %v3763_v13  ;;  %v3519_v13 = vld [vmem:[#allocation3 + $0x68c] ss:$16 sps:$4 sm:$0xff]  }
  0xe0   : > { %2207 = vmatmul.mubr.bf16.vlgmr.msra.gmra.mxu1 %v3765_v14  ;;  %2228 = vmatpush1.bf16.msra.mxu0 %v3496_v15  ;;  %v3517_v14 = vld [vmem:[#allocation3 + $0x688] ss:$16 sps:$4 sm:$0xff]   ;;  %v3588_v15 = vld [vmem:[#allocation3 + $0x50c] ss:$16 sps:$4 sm:$0xff]  }
  0xe1   : > { %2281 = vmatpush1.bf16.msra.mxu1 %v3499_v16  ;;  %2229 = vmatprep.subr.bf16.mxu0 %v3504_v17  ;;  %v3591_v16 = vld [vmem:[#allocation3 + $0x70c] ss:$16 sps:$4 sm:$0xff]   ;;  %v3586_v17 = vld [vmem:[#allocation3 + $0x508] ss:$16 sps:$4 sm:$0xff]  }
  0xe2   : > { %2282 = vmatprep.subr.bf16.mxu1 %v3507_v18  ;;  %2163 = vmatprep.mubr.bf16.mxu0 %v3772_v38  ;;  %v3525_v38 = vld [vmem:[#allocation3 + $0x66c] ss:$16 sps:$4 sm:$0xff]   ;;  %v3589_v18 = vld [vmem:[#allocation3 + $0x708] ss:$16 sps:$4 sm:$0xff]  }
  0xe3   : > { %2216 = vmatprep.mubr.bf16.mxu1 %v3779_v44  ;;  %v3520_v44 = vld [vmem:[#allocation3 + $0x468] ss:$16 sps:$4 sm:$0xff]  }
  0xe4   : > { %2230 = vmatpush1.bf16.msra.mxu0 %v3502_v19  ;;  %v3592_v19 = vld [vmem:[%s3972_s3 + $0x78] sm:$0xff]  }
  0xe5   : > { %2283 = vmatpush1.bf16.msra.mxu1 %v3505_v20  ;;  %2231 = vmatprep.subr.bf16.mxu0 %v3510_v21  ;;  %v3593_v20 = vld [vmem:[%s3972_s3 + $0x38] sm:$0xff]   ;;  %v3594_v21 = vld [vmem:[%s3972_s3 + $0x70] sm:$0xff]  }
  0xe6   : > { %2284 = vmatprep.subr.bf16.mxu1 %v3513_v22  ;;  %v3595_v22 = vld [vmem:[%s3972_s3 + $0x30] sm:$0xff]  }
  0xe7   : > { %2164 = vmatmul.mubr.bf16.gmra.mxu0 %v3777_v43  ;;  %v3526_v43 = vld [vmem:[#allocation3 + $0x448] ss:$16 sps:$4 sm:$0xff]  }
  0xe8   : > { %2217 = vmatmul.mubr.bf16.gmra.mxu1 %v3786_v50  ;;  %2232 = vmatpush1.bf16.msra.mxu0 %v3508_v23  ;;  %v3529_v50 = vld [vmem:[#allocation3 + $0x648] ss:$16 sps:$4 sm:$0xff]  }
  0xe9   : > { %2285 = vmatpush1.bf16.msra.mxu1 %v3511_v24  ;;  %2233 = vmatprep.subr.bf16.mxu0 %v3516_v25  ;;  %v3596_v23 = vld [vmem:[%s3972_s3 + $0x68] sm:$0xff]   ;;  %v3599_v24 = vld [vmem:[%s3972_s3 + $0x20] sm:$0xff]   ;;  %v3611_v25 = vld [vmem:[%s3972_s3 + $0xb0] sm:$0xff]  }
  0xea   : > { %2286 = vmatprep.subr.bf16.mxu1 %v3519_v13  ;;  %2259 = vmatprep.mubr.bf16.mxu0 %v3793_v0  ;;  %v3532_v0 = vld [vmem:[#allocation3 + $0x428] ss:$16 sps:$4 sm:$0xff]  }
  0xeb   : > { %2312 = vmatprep.mubr.bf16.mxu1 %v3795_v1  ;;  %v3535_v1 = vld [vmem:[#allocation3 + $0x628] ss:$16 sps:$4 sm:$0xff]  }
  0xec   : > { %2234 = vmatpush1.bf16.msra.mxu0 %v3514_v54  ;;  %v3601_v13 = vld [vmem:[%s3972_s3 + $0x18] sm:$0xff]   ;;  %v3602_v54 = vld [vmem:[%s3972_s3 + $0x50] sm:$0xff]  }
  0xed   : > { %2287 = vmatpush1.bf16.msra.mxu1 %v3517_v14  ;;  %2235 = vmatprep.subr.bf16.mxu0 %v3522_v55  ;;  %v3612_v14 = vld [vmem:[%s3972_s3 + $0xe8] sm:$0xff]  }
  0xee   : > { %2288 = vmatprep.subr.bf16.mxu1 %v3525_v38  ;;  %v3613_v55 = vld [vmem:[%s3972_s3 + $0xa8] sm:$0xff]   ;;  %v3614_v38 = vld [vmem:[%s3972_s3 + $0xe0] sm:$0xff]  }
  0xf0   : > { %2236 = vmatpush1.bf16.msra.mxu0 %v3520_v44  ;;  %v3603_v44 = vld [vmem:[%s3972_s3 + $0x10] sm:$0xff]  }
  0xf1   : > { %2289 = vmatpush1.bf16.msra.mxu1 %v3523_v26  ;;  %2237 = vmatprep.subr.bf16.mxu0 %v3528_v27  ;;  %v3604_v26 = vld [vmem:[%s3972_s3 + $0x48] sm:$0xff]   ;;  %v3615_v27 = vld [vmem:[%s3972_s3 + $0xa0] sm:$0xff]  }
  0xf2   : > { %2290 = vmatprep.subr.bf16.mxu1 %v3531_v28  ;;  %v3605_v28 = vld [vmem:[%s3972_s3 + $0x8] sm:$0xff]  }
  0xf4   : > { %2238 = vmatpush1.bf16.msra.mxu0 %v3526_v43  ;;  %v3606_v43 = vld [vmem:[%s3972_s3 + $0x40] sm:$0xff]  }
  0xf5   : > { %2291 = vmatpush1.bf16.msra.mxu1 %v3529_v50  ;;  %2239 = vmatprep.subr.bf16.mxu0 %v3534_v29  ;;  %v3607_v50 = vld [vmem:[%s3972_s3] sm:$0xff]  }
  0xf6   : > { %2292 = vmatprep.subr.bf16.mxu1 %v3537_v30 }
  0xf8   : > { %2240 = vmatpush1.bf16.msra.mxu0 %v3532_v0 }
  0xf9   : > { %2293 = vmatpush1.bf16.msra.mxu1 %v3535_v1  ;;  %2241 = vmatprep.subr.bf16.mxu0 %v3540_v31 }
  0xfa   : > { %2294 = vmatprep.subr.bf16.mxu1 %v3543_v32 }
  0xfc   : > { %2242 = vmatpush1.bf16.msra.mxu0 %v3538_v33  ;;  %v609_v33 = vlaneseq }
  0xfd   : > { %2295 = vmatpush1.bf16.msra.mxu1 %v3541_v34  ;;  %2243 = vmatprep.subr.bf16.mxu0 %v3546_v35 }
  0xfe   : > { %2296 = vmatprep.subr.bf16.mxu1 %v3549_v36  ;;  %v3917_v36 = vshrl.u32 %v609_v33, 7 }
 0x100   : > { %2244 = vmatpush2.bf16.msra.mxu0 %v3544_v37 }
 0x101   : > { %2297 = vmatpush2.bf16.msra.mxu1 %v3547_v39  ;;  %2245 = vmatprep.subr.bf16.mxu0 %v3552_v40  ;;  %v615_v40 = vsub.s32 1, %v3917_v36 }
 0x102   : > { %2298 = vmatprep.subr.bf16.mxu1 %v3555_v41  ;;  %v3923_v41 = vld [vmem:[%s3971_s2] sm:$0xf] }
 0x104   : > { %2246 = vmatpush2.bf16.msra.mxu0 %v3550_v42  ;;  %v611_v42 = vsub.s32 0, %v3917_v36 }
 0x105   : > { %2299 = vmatpush2.bf16.msra.mxu1 %v3553_v45  ;;  %2247 = vmatprep.subr.bf16.mxu0 %v3558_v46 }
 0x106   : > { %2300 = vmatprep.subr.bf16.mxu1 %v3561_v47  ;;  %v616_v47 = vrot.slane %v3923_v41, %v615_v40 }
 0x108   : > { %2248 = vmatpush2.bf16.msra.mxu0 %v3556_v51  ;;  %v612_v51 = vrot.slane %v3923_v41, %v611_v42 }
 0x109   : > { %2301 = vmatpush2.bf16.msra.mxu1 %v3559_v52  ;;  %2249 = vmatprep.subr.bf16.mxu0 %v3564_v53 }
 0x10a   : > { %2302 = vmatprep.subr.bf16.mxu1 %v3567_v56 }
 0x10c   : > { %2250 = vmatpush2.bf16.msra.mxu0 %v3562_v57 }
 0x10d   : > { %2303 = vmatpush2.bf16.msra.mxu1 %v3565_v58  ;;  %2251 = vmatprep.subr.bf16.mxu0 %v3570_v60 }
 0x10e   : > { %2304 = vmatprep.subr.bf16.mxu1 %v3573_v61  ;;  %v3616_v61 = vld [vmem:[%s3972_s3 + $0xd8] sm:$0xff]  }
 0x110   : > { %2252 = vmatpush2.bf16.msra.mxu0 %v3568_v63 }
 0x111   : > { %2305 = vmatpush2.bf16.msra.mxu1 %v3571_v2  ;;  %2253 = vmatprep.subr.bf16.mxu0 %v3576_v3  ;;  %v3617_v2 = vld [vmem:[%s3972_s3 + $0x98] sm:$0xff]  }
 0x112   : > { %2306 = vmatprep.subr.bf16.mxu1 %v3579_v4 }
 0x114   : > { %2254 = vmatpush2.bf16.msra.mxu0 %v3574_v6 }
 0x115   : > { %2307 = vmatpush2.bf16.msra.mxu1 %v3577_v7  ;;  %2255 = vmatprep.subr.bf16.mxu0 %v3582_v9 }
 0x116   : > { %2308 = vmatprep.subr.bf16.mxu1 %v3585_v10 }
 0x118   : > { %2256 = vmatpush2.bf16.msra.mxu0 %v3580_v11 }
 0x119   : > { %2309 = vmatpush2.bf16.msra.mxu1 %v3583_v12  ;;  %2257 = vmatprep.subr.bf16.mxu0 %v3588_v15  ;;  %v3618_v12 = vld [vmem:[%s3972_s3 + $0xd0] sm:$0xff]  }
 0x11a   : > { %2310 = vmatprep.subr.bf16.mxu1 %v3591_v16 }
 0x11c   : > { %2258 = vmatpush2.bf16.msra.mxu0 %v3586_v17  ;;  %v3619_v17 = vld [vmem:[%s3972_s3 + $0x90] sm:$0xff]  }
 0x11d   : > { %2311 = vmatpush2.bf16.msra.mxu1 %v3589_v18  ;;  %3131 = vmatprep.subr.bf16.mxu0 %v3592_v19 }
 0x11f   : > { %2260 = vmatmul.mubr.bf16.vlgmr.msra.gmra.mxu0 %v3805_v48  ;;  %v3597_v48 = vld [vmem:[%s3972_s3 + $0x28] sm:$0xff]   ;;  %v1943_v29 = vpop.f32.mrf.mxu0 }
 0x120   : > { %2313 = vmatmul.mubr.bf16.vlgmr.msra.gmra.mxu1 %v3807_v49  ;;  %2269 = vmatprep.mubr.bf16.mxu0 %v3811_v59  ;;  %v3598_v49 = vld [vmem:[%s3972_s3 + $0x60] sm:$0xff]   ;;  %v3608_v59 = vld [vmem:[%s3972_s3 + $0xf8] sm:$0xff]   ;;  %v1996_v30 = vpop.f32.mrf.mxu1  ;;  %v1944_v57 = vadd.f32 %v1943_v29, %v612_v51 }
 0x121   : > { %2322 = vmatprep.mubr.bf16.mxu1 %v3815_v62  ;;  %3132 = vmatpush3.bf16.msra.mxu0 %v3593_v20  ;;  %v3609_v62 = vld [vmem:[%s3972_s3 + $0xb8] sm:$0xff]   ;;  %v1945_v0 = vpop.f32.mrf.mxu0  ;;  %v3622_v29 = vld [vmem:[%s3972_s3 + $0xc0] sm:$0xff]  }
 0x122   : > { %3133 = vmatprep.subr.bf16.mxu0 %v3594_v21  ;;  %3159 = vmatprep.subr.bf16.mxu1 %v3608_v59  ;;  %v1998_v1 = vpop.f32.mrf.mxu1  ;;  %v1946_v56 = vadd.f32 %v1945_v0, %v616_v47  ;;  %v1997_v9 = vadd.f32 %v1996_v30, %v1944_v57 }
 0x123   : > { %3160 = vmatpush3.bf16.msra.mxu1 %v3609_v62  ;;  %v1947_v31 = vpop.f32.mrf.mxu0  ;;  %v3620_v62 = vld [vmem:[%s3972_s3 + $0xc8] sm:$0xff]  }
 0x124   : > { %v2000_v32 = vpop.f32.mrf.mxu1  ;;  %v1948_v63 = vadd.f32 %v1947_v31, %v612_v51  ;;  %v1999_v6 = vadd.f32 %v1998_v1, %v1946_v56 }
 0x125   : > { %3134 = vmatpush3.bf16.msra.mxu0 %v3595_v22  ;;  %v1949_v34 = vpop.f32.mrf.mxu0 }
 0x126   : > { %3135 = vmatprep.subr.bf16.mxu0 %v3596_v23  ;;  %v2002_v35 = vpop.f32.mrf.mxu1  ;;  %v1950_v7 = vadd.f32 %v1949_v34, %v616_v47  ;;  %v2001_v15 = vadd.f32 %v2000_v32, %v1948_v63  ;;  %v3623_v32 = vld [vmem:[%s3972_s3 + $0x80] sm:$0xff]  }
 0x127   : > { %2270 = vmatmul.mubr.bf16.gmra.mxu0 %v3823_v5  ;;  %v3600_v5 = vld [vmem:[%s3972_s3 + $0x58] sm:$0xff]   ;;  %v1953_v37 = vpop.f32.mrf.mxu0 }
 0x128   : > { %2323 = vmatmul.mubr.bf16.gmra.mxu1 %v3825_v8  ;;  %v3610_v8 = vld [vmem:[%s3972_s3 + $0xf0] sm:$0xff]   ;;  %v2006_v39 = vpop.f32.mrf.mxu1  ;;  %v2003_v21 = vadd.f32 %v2002_v35, %v1950_v7 }
 0x129   : > { %3136 = vmatpush3.bf16.msra.mxu0 %v3597_v48  ;;  %3161 = vmatprep.subr.bf16.mxu1 %v3610_v8  ;;  %v1955_v45 = vpop.f32.mrf.mxu0  ;;  %v1954_v48 = vadd.f32 %v1953_v37, %v612_v51 }
 0x12a   : > { %3137 = vmatprep.subr.bf16.mxu0 %v3598_v49  ;;  %3162 = vmatpush3.bf16.msra.mxu1 %v3611_v25  ;;  %v2008_v46 = vpop.f32.mrf.mxu1  ;;  %v1956_v22 = vadd.f32 %v1955_v45, %v616_v47 }
 0x12b   : > { %3163 = vmatprep.subr.bf16.mxu1 %v3612_v14  ;;  %v1957_v52 = vpop.f32.mrf.mxu0 }
 0x12c   : > { %v2010_v53 = vpop.f32.mrf.mxu1 }
 0x12d   : > { %3138 = vmatpush3.bf16.msra.mxu0 %v3599_v24  ;;  %v1959_v58 = vpop.f32.mrf.mxu0  ;;  %v1958_v24 = vadd.f32 %v1957_v52, %v612_v51 }
 0x12e   : > { %3139 = vmatprep.subr.bf16.mxu0 %v3600_v5  ;;  %3164 = vmatpush3.bf16.msra.mxu1 %v3613_v55  ;;  %v2012_v60 = vpop.f32.mrf.mxu1 }
 0x12f   : > { %3165 = vmatprep.subr.bf16.mxu1 %v3614_v38  ;;  %v2009_v38 = vadd.f32 %v2008_v46, %v1956_v22  ;;  %v2011_v30 = vadd.f32 %v2010_v53, %v1958_v24 }
 0x131   : > { %3140 = vmatpush3.bf16.msra.mxu0 %v3601_v13  ;;  %v3621_v13 = vld [vmem:[%s3972_s3 + $0x88] sm:$0xff]  }
 0x132   : > { %3141 = vmatprep.subr.bf16.mxu0 %v3602_v54  ;;  %3166 = vmatpush3.bf16.msra.mxu1 %v3615_v27  ;;  %v2007_v27 = vadd.f32 %v2006_v39, %v1954_v48 }
 0x133   : > { %3167 = vmatprep.subr.bf16.mxu1 %v3616_v61 }
 0x135   : > { %3142 = vmatpush3.bf16.msra.mxu0 %v3603_v44  ;;  %v1960_v44 = vadd.f32 %v1959_v58, %v616_v47 }
 0x136   : > { %3143 = vmatprep.subr.bf16.mxu0 %v3604_v26  ;;  %3168 = vmatpush3.bf16.msra.mxu1 %v3617_v2 }
 0x137   : > { %3169 = vmatprep.subr.bf16.mxu1 %v3618_v12  ;;  %v2013_v39 = vadd.f32 %v2012_v60, %v1960_v44 }
 0x139   : > { %3144 = vmatpush3.bf16.msra.mxu0 %v3605_v28 }
 0x13a   : > { %3145 = vmatprep.subr.bf16.mxu0 %v3606_v43  ;;  %3170 = vmatpush3.bf16.msra.mxu1 %v3619_v17 }
 0x13b   : > { %3171 = vmatprep.subr.bf16.mxu1 %v3620_v62 }
 0x13d   : > { %3146 = vmatpush3.bf16.msra.mxu0 %v3607_v50 }
 0x13e   : > { %3172 = vmatpush3.bf16.msra.mxu1 %v3621_v13 }
 0x13f   : > { %3173 = vmatprep.subr.bf16.mxu1 %v3622_v29 }
 0x142   : > { %3174 = vmatpush3.bf16.msra.mxu1 %v3623_v32 }
 0x15f   : > { %v2049_v3 = vpop.f32.mrf.mxu0 }
 0x160   : > { %v2102_v4 = vpop.f32.mrf.mxu1  ;;  %v2050_v18 = vadd.f32 %v2049_v3, %v1997_v9 }
 0x161   : > { %v2051_v10 = vpop.f32.mrf.mxu0 }
 0x162   : > { %v2104_v11 = vpop.f32.mrf.mxu1  ;;  %v2052_v16 = vadd.f32 %v2051_v10, %v1999_v6  ;;  %v2103_v54 = vadd.f32 %v2102_v4, %v2050_v18  ;;  %v623_v18 = vsub.s32 3, %v3917_v36 }
 0x163   : > { %v2053_v19 = vpop.f32.mrf.mxu0 }
 0x164   : > { %v2106_v20 = vpop.f32.mrf.mxu1  ;;  %v2054_v23 = vadd.f32 %v2053_v19, %v2001_v15  ;;  %v2105_v5 = vadd.f32 %v2104_v11, %v2052_v16  ;;  %v2333_v33 = vmax.f32 %v2103_v54, 0.0  ;;  %v619_v19 = vsub.s32 2, %v3917_v36 }
 0x165   : > { %v2055_v49 = vpop.f32.mrf.mxu0  ;;  %v624_v22 = vrot.slane %v3923_v41, %v623_v18 }
 0x166   : > { %v2108_v59 = vpop.f32.mrf.mxu1  ;;  %v2107_v8 = vadd.f32 %v2106_v20, %v2054_v23  ;;  %v2056_v25 = vadd.f32 %v2055_v49, %v2003_v21  ;;  %v2334_v0 = vmax.f32 %v2105_v5, 0.0  ;;  %v620_v23 = vrot.slane %v3923_v41, %v619_v19 }
 0x167   : > { %v2059_v14 = vpop.f32.mrf.mxu0 }
 0x168   : > { %v2112_v55 = vpop.f32.mrf.mxu1  ;;  %v2109_v26 = vadd.f32 %v2108_v59, %v2056_v25  ;;  %v2337_v28 = vmax.f32 %v2107_v8, 0.0  ;;  %v2060_v34 = vadd.f32 %v2059_v14, %v2007_v27 }
 0x169   : > { %v2061_v43 = vpop.f32.mrf.mxu0 }
 0x16a   : > { %v2114_v50 = vpop.f32.mrf.mxu1  ;;  %v2338_v1 = vmax.f32 %v2109_v26, 0.0  ;;  %v2062_v31 = vadd.f32 %v2061_v43, %v2009_v38  ;;  %v2349_v45 = vpack.c.bf16 %v2337_v28, %v2333_v33  ;;  %v2113_v56 = vadd.f32 %v2112_v55, %v2060_v34 }
 0x16b   : > { %v2063_v35 = vpop.f32.mrf.mxu0 }
 0x16c   : > { %v2116_v37 = vpop.f32.mrf.mxu1  ;;  %v2350_v40 = vpack.c.bf16 %v2338_v1, %v2334_v0  ;;  %v2064_v42 = vadd.f32 %v2063_v35, %v2011_v30  ;;  %v2115_v51 = vadd.f32 %v2114_v50, %v2062_v31  ;;  %v2341_v2 = vmax.f32 %v2113_v56, 0.0 }
 0x16d   : > { %v2065_v46 = vpop.f32.mrf.mxu0 }
 0x16e   : > { %v2118_v47 = vpop.f32.mrf.mxu1  ;;  %v2066_v52 = vadd.f32 %v2065_v46, %v2013_v39  ;;  %v2117_v53 = vadd.f32 %v2116_v37, %v2064_v42  ;;  %2652 = vmatprep.mubr.bf16.mxu0 %v2350_v40  ;;  %v2342_v61 = vmax.f32 %v2115_v51, 0.0 }
 0x16f   : > { %2653 = vmatmul.mubr.bf16.vlgmr.msra.gmra.mxu0 %v2349_v45 }
 0x170   : > { %v2119_v57 = vadd.f32 %v2118_v47, %v2066_v52  ;;  %v2345_v58 = vmax.f32 %v2117_v53, 0.0 }
 0x172   : > { %v2346_v63 = vmax.f32 %v2119_v57, 0.0  ;;  %v2353_v4 = vpack.c.bf16 %v2345_v58, %v2341_v2 }
 0x174   : > { %v2354_v3 = vpack.c.bf16 %v2346_v63, %v2342_v61 }
 0x176   : > { %2660 = vmatprep.mubr.bf16.mxu0 %v2354_v3 }
 0x177   : > { %2661 = vmatmul.mubr.bf16.gmra.mxu0 %v2353_v4 }
 0x19f   : > { %v2155_v60 = vpop.f32.mrf.mxu0 }
 0x1a0   : > { %v2208_v6 = vpop.f32.mrf.mxu1  ;;  %v2156_v62 = vadd.f32 %v2155_v60, %v620_v23 }
 0x1a1   : > { %v2157_v7 = vpop.f32.mrf.mxu0 }
 0x1a2   : > { %v2210_v9 = vpop.f32.mrf.mxu1  ;;  %v2158_v59 = vadd.f32 %v2157_v7, %v624_v22  ;;  %v2209_v55 = vadd.f32 %v2208_v6, %v2156_v62 }
 0x1a3   : > { %v2159_v10 = vpop.f32.mrf.mxu0 }
 0x1a4   : > { %v2212_v11 = vpop.f32.mrf.mxu1  ;;  %v2160_v8 = vadd.f32 %v2159_v10, %v620_v23  ;;  %v2211_v54 = vadd.f32 %v2210_v9, %v2158_v59 }
 0x1a5   : > { %v2161_v12 = vpop.f32.mrf.mxu0 }
 0x1a6   : > { %v2214_v15 = vpop.f32.mrf.mxu1  ;;  %v2162_v14 = vadd.f32 %v2161_v12, %v624_v22  ;;  %v2213_v44 = vadd.f32 %v2212_v11, %v2160_v8  ;;  %v3093_v8 = vld [vmem:[%s3973_s4] ss:$0 sm:$0xff] }
 0x1a7   : > { %v2165_v16 = vpop.f32.mrf.mxu0 }
 0x1a8   : > { %v2218_v17 = vpop.f32.mrf.mxu1  ;;  %v2215_v41 = vadd.f32 %v2214_v15, %v2162_v14  ;;  %v2166_v30 = vadd.f32 %v2165_v16, %v620_v23 }
 0x1a9   : > { %v2167_v20 = vpop.f32.mrf.mxu0 }
 0x1aa   : > { %v2220_v21 = vpop.f32.mrf.mxu1  ;;  %v2168_v50 = vadd.f32 %v2167_v20, %v624_v22  ;;  %v2219_v46 = vadd.f32 %v2218_v17, %v2166_v30 }
 0x1ab   : > { %v2169_v48 = vpop.f32.mrf.mxu0 }
 0x1ac   : > { %v2222_v49 = vpop.f32.mrf.mxu1  ;;  %v2170_v31 = vadd.f32 %v2169_v48, %v620_v23  ;;  %v2221_v40 = vadd.f32 %v2220_v21, %v2168_v50 }
 0x1ad   : > { %v2171_v24 = vpop.f32.mrf.mxu0 }
 0x1ae   : > { %v2224_v5 = vpop.f32.mrf.mxu1  ;;  %v2172_v42 = vadd.f32 %v2171_v24, %v624_v22  ;;  %v2223_v53 = vadd.f32 %v2222_v49, %v2170_v31 }
 0x1b0   : > { %v2225_v4 = vadd.f32 %v2224_v5, %v2172_v42 }
 0x1df   : > { %v2261_v25 = vpop.f32.mrf.mxu0 }
 0x1e0   : > { %v2314_v13 = vpop.f32.mrf.mxu1  ;;  %v2262_v27 = vadd.f32 %v2261_v25, %v2209_v55 }
 0x1e1   : > { %v2263_v38 = vpop.f32.mrf.mxu0 }
 0x1e2   : > { %v2316_v36 = vpop.f32.mrf.mxu1  ;;  %v2264_v26 = vadd.f32 %v2263_v38, %v2211_v54  ;;  %v2315_v35 = vadd.f32 %v2314_v13, %v2262_v27 }
 0x1e3   : > { %v2265_v28 = vpop.f32.mrf.mxu0 }
 0x1e4   : > { %v2318_v43 = vpop.f32.mrf.mxu1  ;;  %v2266_v29 = vadd.f32 %v2265_v28, %v2213_v44  ;;  %v2317_v32 = vadd.f32 %v2316_v36, %v2264_v26  ;;  %v2335_v61 = vmax.f32 %v2315_v35, 0.0  ;;  %v3126_v28 = vld [vmem:[%s3974_s5] ss:$0 sm:$0xff] }
 0x1e5   : > { %v2267_v0 = vpop.f32.mrf.mxu0 }
 0x1e6   : > { %v2320_v1 = vpop.f32.mrf.mxu1  ;;  %v2319_v33 = vadd.f32 %v2318_v43, %v2266_v29  ;;  %v2268_v34 = vadd.f32 %v2267_v0, %v2215_v41  ;;  %v2336_v56 = vmax.f32 %v2317_v32, 0.0 }
 0x1e7   : > { %v2271_v37 = vpop.f32.mrf.mxu0 }
 0x1e8   : > { %v2324_v39 = vpop.f32.mrf.mxu1  ;;  %v2321_v45 = vadd.f32 %v2320_v1, %v2268_v34  ;;  %v2339_v47 = vmax.f32 %v2319_v33, 0.0  ;;  %v2272_v63 = vadd.f32 %v2271_v37, %v2219_v46 }
 0x1e9   : > { %v2273_v51 = vpop.f32.mrf.mxu0 }
 0x1ea   : > { %v2326_v52 = vpop.f32.mrf.mxu1  ;;  %v2340_v57 = vmax.f32 %v2321_v45, 0.0  ;;  %v2274_v58 = vadd.f32 %v2273_v51, %v2221_v40  ;;  %v2351_v7 = vpack.c.bf16 %v2339_v47, %v2335_v61  ;;  %v2325_v15 = vadd.f32 %v2324_v39, %v2272_v63 }
 0x1eb   : > { %v2275_v2 = vpop.f32.mrf.mxu0 }
 0x1ec   : > { %v2328_v3 = vpop.f32.mrf.mxu1  ;;  %v2352_v60 = vpack.c.bf16 %v2340_v57, %v2336_v56  ;;  %v2276_v6 = vadd.f32 %v2275_v2, %v2223_v53  ;;  %v2327_v10 = vadd.f32 %v2326_v52, %v2274_v58  ;;  %v2343_v21 = vmax.f32 %v2325_v15, 0.0  ;;  %v3127_v58 = vld [vmem:[#allocation2] ss:$0 sm:$0xff] }
 0x1ed   : > { %v2277_v9 = vpop.f32.mrf.mxu0 }
 0x1ee   : > { %v2329_v11 = vadd.f32 %v2328_v3, %v2276_v6  ;;  %v2278_v12 = vadd.f32 %v2277_v9, %v2225_v4  ;;  %2701 = vmatprep.mubr.bf16.mxu1 %v2352_v60  ;;  %v2330_v16 = vpop.f32.mrf.mxu1  ;;  %v2344_v19 = vmax.f32 %v2327_v10, 0.0 }
 0x1ef   : > { %2702 = vmatmul.mubr.bf16.vlgmr.msra.gmra.mxu1 %v2351_v7 }
 0x1f0   : > { %v2331_v17 = vadd.f32 %v2330_v16, %v2278_v12  ;;  %v2347_v18 = vmax.f32 %v2329_v11, 0.0 }
 0x1f2   : > { %v2348_v20 = vmax.f32 %v2331_v17, 0.0  ;;  %v2355_v23 = vpack.c.bf16 %v2347_v18, %v2343_v21 }
 0x1f4   : > { %v2356_v22 = vpack.c.bf16 %v2348_v20, %v2344_v19 }
 0x1f6   : > { %2709 = vmatprep.mubr.bf16.mxu1 %v2356_v22 }
 0x1f7   : > { %2710 = vmatmul.mubr.bf16.gmra.mxu1 %v2355_v23 }
 0x22f   : > { %v3147_v48 = vpop.f32.mrf.mxu0 }
 0x231   : > { %v3148_v49 = vpop.f32.mrf.mxu0 }
 0x232   : > { %v3149_v5 = vadd.f32 %v3148_v49, %v3147_v48 }
 0x233   : > { %v3150_v59 = vpop.f32.mrf.mxu0 }
 0x234   : > { %v2655_v14 = vadd.f32 %v3149_v5, %v3093_v8 }
 0x235   : > { %v3151_v62 = vpop.f32.mrf.mxu0 }
 0x236   : > { %v3152_v55 = vadd.f32 %v3151_v62, %v3150_v59 }
 0x237   : > { %v3153_v24 = vpop.f32.mrf.mxu0 }
 0x238   : > { %v2658_v43 = vadd.f32 %v3152_v55, %v3093_v8 }
 0x239   : > { %v3154_v25 = vpop.f32.mrf.mxu0 }
 0x23a   : > { %v3155_v41 = vadd.f32 %v3154_v25, %v3153_v24 }
 0x23b   : > { %v3156_v36 = vpop.f32.mrf.mxu0 }
 0x23c   : > { %v2663_v33 = vadd.f32 %v3155_v41, %v3093_v8 }
 0x23d   : > { %v3157_v30 = vpop.f32.mrf.mxu0 }
 0x23e   : > { %v3158_v34 = vadd.f32 %v3157_v30, %v3156_v36 }
 0x240   : > { %v2666_v46 = vadd.f32 %v3158_v34, %v3093_v8 }
 0x2af   : > { %v3175_v13 = vpop.f32.mrf.mxu1 }
 0x2b1   : > { %v3176_v54 = vpop.f32.mrf.mxu1 }
 0x2b2   : > { %v3177_v38 = vadd.f32 %v3176_v54, %v3175_v13 }
 0x2b3   : > { %v3178_v44 = vpop.f32.mrf.mxu1 }
 0x2b4   : > { %v2704_v26 = vadd.f32 %v3177_v38, %v2655_v14 }
 0x2b5   : > { %v3179_v27 = vpop.f32.mrf.mxu1 }
 0x2b6   : > { %v3180_v50 = vadd.f32 %v3179_v27, %v3178_v44  ;;  %v2718_v29 = vmax.f32 %v2704_v26, 0.0 }
 0x2b7   : > { %v3181_v0 = vpop.f32.mrf.mxu1 }
 0x2b8   : > { %v2707_v1 = vadd.f32 %v3180_v50, %v2658_v43  ;;  %v2729_v31 = vmul.f32 %v3126_v28, %v2718_v29 }
 0x2b9   : > { %v3182_v32 = vpop.f32.mrf.mxu1 }
 0x2ba   : > { %v2719_v35 = vmax.f32 %v2707_v1, 0.0  ;;  %v3183_v37 = vadd.f32 %v3182_v32, %v3181_v0  ;;  %2733 = vadd.xlane.f32.xlu0 %v2729_v31 }
 0x2bb   : > { %v3184_v39 = vpop.f32.mrf.mxu1 }
 0x2bc   : > { %v2730_v40 = vmul.f32 %v3126_v28, %v2719_v35  ;;  %v2712_v42 = vadd.f32 %v3183_v37, %v2663_v33 }
 0x2bd   : > { %v3185_v45 = vpop.f32.mrf.mxu1 }
 0x2be   : > { %v3186_v47 = vadd.f32 %v3185_v45, %v3184_v39  ;;  %2735 = vadd.xlane.f32.xlu0 %v2730_v40  ;;  %v2720_v51 = vmax.f32 %v2712_v42, 0.0 }
 0x2c0   : > { %v2715_v52 = vadd.f32 %v3186_v47, %v2666_v46  ;;  %v2731_v53 = vmul.f32 %v3126_v28, %v2720_v51 }
 0x2c2   : > { %v2721_v56 = vmax.f32 %v2715_v52, 0.0  ;;  %2737 = vadd.xlane.f32.xlu1 %v2731_v53 }
 0x2c4   : > { %v2732_v57 = vmul.f32 %v3126_v28, %v2721_v56 }
 0x2c6   : > { %2739 = vadd.xlane.f32.xlu1 %v2732_v57 }
 0x343   : > { %v2734_v61 = vpop.xlane.xlu0 %2733 }
 0x344   : > { %v2748_v63 = vadd.f32 %v3127_v58, %v2734_v61 }
 0x346   : > { %2753 = vst.msk [vmem:[%s300_s25] sm:$0xff] %vm2752_vm0, %v2748_v63 }
 0x347   : > { %v2736_v2 = vpop.xlane.xlu0 %2735 }
 0x348   : > { %v2749_v3 = vadd.f32 %v3127_v58, %v2736_v2 }
 0x34a   : > { %2754 = vst.msk [vmem:[%s300_s25 + $0x8] sm:$0xff] %vm2752_vm0, %v2749_v3 }
 0x34b   : > { %v2738_v4 = vpop.xlane.xlu1 %2737 }
 0x34c   : > { %v2750_v60 = vadd.f32 %v3127_v58, %v2738_v4 }
 0x34e   : > { %2755 = vst.msk [vmem:[%s300_s25 + $0x10] sm:$0xff] %vm2752_vm0, %v2750_v60 }
 0x34f   : > { %v2740_v6 = vpop.xlane.xlu1 %2739 }
 0x350   : > { %v2751_v7 = vadd.f32 %v3127_v58, %v2740_v6 }
 0x352   : > { %2756 = vst.msk [vmem:[%s300_s25 + $0x18] sm:$0xff] %vm2752_vm0, %v2751_v7 }
 0x353 PF: > { %s20_s26 = sadd.s32 1, %s3660_s26  }
 0x354   : > { %p17_p1 = scmp.ge.s32.totalorder %s20_s26, 4  }
 0x356   :  { %19 = sbr.rel (!%p17_p1) target bundleno = 4 (0x4), region = 83 }
 0x35b   :  { %2779 = vsyncpa [#allocation4], 1 }
 0x35c   :  { %2781 = vsyncpa [#allocation4 + $0x1], 1 }

</bundles_post_ra>
